<compile_context>
chip_gen: v5e
topology: v5e:2x2
jax: 0.10.0
libtpu: 0.0.40
codegen_flags: <defaults>
</compile_context>

<pallas_src>
import numpy as np
import jax
import jax.numpy as jnp
from jax.experimental import pallas as pl
from jax.experimental.pallas import tpu as pltpu

# dims implied by the torch module: (N,1,32,32) -> conv1(1->4) -> pool ->
# conv2(4->8) -> pool -> flatten(8*8*8=512) -> linear(512->29)
H1, W1 = 32, 32
C1 = 4
H2, W2 = 16, 16
C2 = 8
HF, WF = 8, 8
NCLS = 29
L = 128          # lane width; W1*C1 == W2*C2 == 128 (lane-dense layout)


# ----------------------------------------------------------------------------
# Fused kernel: processes a block of B images.  Activation rows are stacked as
# row = b*H + h; image boundaries are handled with precomputed row masks.
# ----------------------------------------------------------------------------
def _fused_cnn_kernel(x_ref, w1_ref, b1_ref, w2_ref, b2_ref, wl_ref, bl_ref,
                      mk1_ref, mk2_ref, o_ref):
    f32 = jnp.float32
    B = x_ref.shape[0]
    R1 = B * H1          # stacked conv1 rows
    R2 = B * H2          # stacked conv2 rows
    R3 = B * HF          # stacked flattened rows

    # ---------------- conv1 (+bias, ReLU): one merged MXU dot ----------------
    x = x_ref[...].reshape(R1, W1)                               # (B*32, 32)
    xw = jnp.concatenate([x, jnp.zeros((R1, L - W1), f32)], axis=1)   # (R1,128)
    # row r-1 / r+1 via sublane roll (XLU); boundary rows killed by the mask
    x_up = pltpu.roll(xw, 1, 0) * mk1_ref[:, 0:1]
    x_dn = pltpu.roll(xw, R1 - 1, 0) * mk1_ref[:, 1:2]
    xcat = jnp.concatenate([x_up, xw, x_dn], axis=1)             # (R1,384) aligned
    y1 = jnp.dot(xcat, w1_ref[...], preferred_element_type=f32)  # (R1,128)
    y1 = jnp.maximum(y1 + b1_ref[...], 0.0)                      # lane = w*4 + c

    # ---------------- maxpool 2x2 (rows via reshape-max, cols via lane roll) -
    rp1 = jnp.max(y1.reshape(R2, 2, L), axis=1)                  # (B*16,128)
    cm1 = jnp.maximum(rp1, pltpu.roll(rp1, L - C1, 1))           # lanes 8*w'+c (c<4)
    # (wrapped / odd-pixel lanes are garbage but hit all-zero rows of w2 slab)

    # ---------------- conv2 (+bias, ReLU): one merged MXU dot ----------------
    c_up = pltpu.roll(cm1, 1, 0) * mk2_ref[:, 0:1]
    c_dn = pltpu.roll(cm1, R2 - 1, 0) * mk2_ref[:, 1:2]
    ccat = jnp.concatenate([c_up, cm1, c_dn], axis=1)            # (R2,384)
    y2 = jnp.dot(ccat, w2_ref[...], preferred_element_type=f32)  # (R2,128)
    y2 = jnp.maximum(y2 + b2_ref[...], 0.0)                      # lane = w*8 + c

    # ---------------- maxpool 2x2 ---------------------------------------------
    rp2 = jnp.max(y2.reshape(R3, 2, L), axis=1)                  # (B*8, 128)
    cm2 = jnp.maximum(rp2, pltpu.roll(rp2, L - C2, 1))           # lanes 16*w'+c (c<8)

    # ---------------- flatten (torch C,H,W order folded into wl slab) + linear
    cm2_3d = cm2.reshape(B, HF, L)
    flat = jnp.concatenate([cm2_3d[:, h, :] for h in range(HF)], axis=1)  # (B,1024)
    o_ref[...] = (jnp.dot(flat, wl_ref[...], preferred_element_type=f32)
                  + bl_ref[...])


# ----------------------------------------------------------------------------
# Glue: turn the torch-layout parameters into lane-dense MXU slabs.
# ----------------------------------------------------------------------------
_HI = jax.lax.Precision.HIGHEST   # keep weights exactly f32 in the glue einsums


def _conv1_row_mats(w1):
    # M[kh, w_in, w*4+co] = w1[co,0,kh,kw] with kw = w_in - w + 1 (else 0)
    wi = np.arange(W1)[:, None, None]
    wo = np.arange(W1)[None, :, None]
    kw = np.arange(3)[None, None, :]
    ind = (wi == wo + kw - 1).astype(np.float32)              # (32,32,3)
    m = jnp.einsum('iwk,ohk->hiwo', jnp.asarray(ind),
                   w1[:, 0].astype(jnp.float32), precision=_HI)
    return m.reshape(3, W1, W1 * C1)                           # (3,32,128)


def _conv1_slab(w1):
    # stack the 3 row-band matrices into one (3*128, 128) slab; the input-width
    # rows are zero-padded 32 -> 128 so the in-kernel lane concat is tile-aligned
    m = jnp.pad(_conv1_row_mats(w1), ((0, 0), (0, L - W1), (0, 0)))
    return m.reshape(3 * L, L)                                 # (384,128)


def _conv2_row_mats(w2):
    # N[kh, 8*w_in+ci (ci<4), w*8+co] = w2[co,ci,kh,kw], kw = w_in - w + 1
    # (odd-pixel / wrapped garbage lanes of the pooled input map to zero rows)
    li = np.arange(L)[:, None, None, None]
    wo = np.arange(W2)[None, :, None, None]
    ci = np.arange(C1)[None, None, :, None]
    kw = np.arange(3)[None, None, None, :]
    ind = (li == 8 * (wo + kw - 1) + ci).astype(np.float32)    # (128,16,4,3)
    n = jnp.einsum('lwik,oihk->hlwo', jnp.asarray(ind),
                   w2.astype(jnp.float32), precision=_HI)
    return n.reshape(3, L, W2 * C2)                            # (3,128,128)


def _conv2_slab(w2):
    return _conv2_row_mats(w2).reshape(3 * L, L)               # (384,128)


def _linear_slab(wl):
    # gl[h, 16*w'+co (co<8), f] = wl[f, co*64 + h*8 + w']  (torch C,H,W flatten)
    wlr = wl.astype(jnp.float32).reshape(NCLS, C2, HF, WF)     # (f,c,h,w)
    li = np.arange(L)[:, None, None]
    wp = np.arange(WF)[None, :, None]
    co = np.arange(C2)[None, None, :]
    ind = (li == 16 * wp + co).astype(np.float32)              # (128,8,8)
    gl = jnp.einsum('lwc,fchw->hlf', jnp.asarray(ind), wlr,
                    precision=_HI)                             # (8,128,29)
    return gl.reshape(HF * L, NCLS)                            # (1024,29)


def _row_masks(bb, h):
    # col 0: keep when reading row r-1 (0 at h==0); col 1: keep for row r+1
    r = np.arange(bb * h) % h
    keep_up = (r != 0).astype(np.float32)
    keep_dn = (r != h - 1).astype(np.float32)
    return jnp.asarray(np.stack([keep_up, keep_dn], axis=1))   # (bb*h, 2)


def _round_up(v, m):
    return ((v + m - 1) // m) * m


def _pick_bb_and_vmem(n):
    # Largest batch block that amortizes per-step overhead and fits VMEM.
    try:
        vmem_bytes = int(pltpu.get_tpu_info().vmem_capacity_bytes)
    except Exception:
        vmem_bytes = 64 * 1024 * 1024                  # conservative (v7x)
    if vmem_bytes >= 128 * 1024 * 1024:                # v5e / v6e
        cap, vlim = 256, 96 * 1024 * 1024
    else:                                              # v7x: 64 MiB per TC
        cap, vlim = 128, 48 * 1024 * 1024
    if n <= 8:
        return n, vlim
    n8 = _round_up(n, 8)
    steps = -(-n8 // cap)
    bb = _round_up(-(-n8 // steps), 8)                 # balanced, <= cap, %8==0
    return bb, vlim


def cnn_forward(x_nchw, params):
    w1, b1, w2, b2, wl, bl = params
    n = x_nchw.shape[0]
    x3 = x_nchw[:, 0, :, :].astype(jnp.float32)                # (N,32,32), Cin=1

    bb, vlim = _pick_bb_and_vmem(n)
    n_pad = pl.cdiv(n, bb) * bb
    if n_pad != n:
        x3 = jnp.pad(x3, ((0, n_pad - n), (0, 0), (0, 0)))

    w1s = _conv1_slab(w1)                                      # (384,128)
    w2s = _conv2_slab(w2)                                      # (384,128)
    wls = _linear_slab(wl)                                     # (1024,29)
    b1r = jnp.tile(b1.astype(jnp.float32), W1).reshape(1, L)   # lane = w*4+c
    b2r = jnp.tile(b2.astype(jnp.float32), W2).reshape(1, L)   # lane = w*8+c
    blr = bl.astype(jnp.float32).reshape(1, NCLS)
    mk1 = _row_masks(bb, H1)                                   # (bb*32, 2)
    mk2 = _row_masks(bb, H2)                                   # (bb*16, 2)

    out = pl.pallas_call(
        _fused_cnn_kernel,
        out_shape=jax.ShapeDtypeStruct((n_pad, NCLS), jnp.float32),
        grid=(n_pad // bb,),
        in_specs=[
            pl.BlockSpec((bb, H1, W1), lambda i: (i, 0, 0)),
            pl.BlockSpec((3 * L, L), lambda i: (0, 0)),
            pl.BlockSpec((1, L), lambda i: (0, 0)),
            pl.BlockSpec((3 * L, L), lambda i: (0, 0)),
            pl.BlockSpec((1, L), lambda i: (0, 0)),
            pl.BlockSpec((HF * L, NCLS), lambda i: (0, 0)),
            pl.BlockSpec((1, NCLS), lambda i: (0, 0)),
            pl.BlockSpec((bb * H1, 2), lambda i: (0, 0)),
            pl.BlockSpec((bb * H2, 2), lambda i: (0, 0)),
        ],
        out_specs=pl.BlockSpec((bb, NCLS), lambda i: (i, 0)),
        compiler_params=pltpu.CompilerParams(
            dimension_semantics=("parallel",),
            vmem_limit_bytes=vlim,
        ),
    )(x3, w1s, b1r, w2s, b2r, wls, blr, mk1, mk2)
    return out[:n]


# ----------------------------------------------------------------------------
# Plain-JAX reference (same math as the PyTorch module) for verification.
# ----------------------------------------------------------------------------
def reference_forward(x_nchw, params):
    w1, b1, w2, b2, wl, bl = params

    def conv(x, w, b):
        y = jax.lax.conv_general_dilated(
            x, w, (1, 1), ((1, 1), (1, 1)),
            dimension_numbers=("NCHW", "OIHW", "NCHW"))
        return y + b[None, :, None, None]

    def pool(x):
        return jax.lax.reduce_window(
            x, -jnp.inf, jax.lax.max, (1, 1, 2, 2), (1, 1, 2, 2), "VALID")

    y = pool(jax.nn.relu(conv(x_nchw, w1, b1)))
    y = pool(jax.nn.relu(conv(y, w2, b2)))
    y = y.reshape(y.shape[0], -1)
    return y @ wl.T + bl


def init_params(key):
    k1, k2, k3, k4, k5, k6 = jax.random.split(key, 6)
    w1 = jax.random.normal(k1, (4, 1, 3, 3), jnp.float32) * 0.2
    b1 = jax.random.normal(k2, (4,), jnp.float32) * 0.1
    w2 = jax.random.normal(k3, (8, 4, 3, 3), jnp.float32) * 0.1
    b2 = jax.random.normal(k4, (8,), jnp.float32) * 0.1
    wl = jax.random.normal(k5, (29, 512), jnp.float32) * 0.05
    bl = jax.random.normal(k6, (29,), jnp.float32) * 0.05
    return (w1, b1, w2, b2, wl, bl)


if __name__ == "__main__":
    key = jax.random.PRNGKey(0)
    kx, kp = jax.random.split(key)
    # forward implies 32x32 input (32 -> 16 -> 8, 8*8*8 = 512 into the linear)
    x = jax.random.normal(kx, (2, 1, 32, 32), jnp.float32)
    params = init_params(kp)

    out = jax.block_until_ready(jax.jit(cnn_forward)(x, params))
    assert out.shape == (2, 29)

    ref = reference_forward(x, params)
    np.testing.assert_allclose(np.asarray(out), np.asarray(ref),
                               rtol=5e-4, atol=5e-4)
    print("KERNEL_OK")
</pallas_src>

<mosaic_0001>
module attributes {stable_mosaic.version = 11 : i64} {
  func.func @_fused_cnn_kernel(%arg0: i32, %arg1: memref<2x32x32xf32, #tpu.memory_space<vmem>>, %arg2: memref<384x128xf32, #tpu.memory_space<vmem>>, %arg3: memref<1x128xf32, #tpu.memory_space<vmem>>, %arg4: memref<384x128xf32, #tpu.memory_space<vmem>>, %arg5: memref<1x128xf32, #tpu.memory_space<vmem>>, %arg6: memref<1024x29xf32, #tpu.memory_space<vmem>>, %arg7: memref<1x29xf32, #tpu.memory_space<vmem>>, %arg8: memref<64x2xf32, #tpu.memory_space<vmem>>, %arg9: memref<32x2xf32, #tpu.memory_space<vmem>>, %arg10: memref<2x29xf32, #tpu.memory_space<vmem>>) attributes {dimension_semantics = [#tpu.dimension_semantics<parallel>], iteration_bounds = array<i64: 1>, scalar_prefetch = 0 : i64, scratch_operands = 0 : i64, tpu.core_type = #tpu.core_type<tc>, window_params = [{transform_indices = @transform_0, window_bounds = array<i64: 2, 32, 32>}, {pipeline_mode = #tpu.pipeline_mode<synchronous>, transform_indices = @transform_1, window_bounds = array<i64: 384, 128>}, {pipeline_mode = #tpu.pipeline_mode<synchronous>, transform_indices = @transform_2, window_bounds = array<i64: 1, 128>}, {pipeline_mode = #tpu.pipeline_mode<synchronous>, transform_indices = @transform_3, window_bounds = array<i64: 384, 128>}, {pipeline_mode = #tpu.pipeline_mode<synchronous>, transform_indices = @transform_4, window_bounds = array<i64: 1, 128>}, {pipeline_mode = #tpu.pipeline_mode<synchronous>, transform_indices = @transform_5, window_bounds = array<i64: 1024, 29>}, {pipeline_mode = #tpu.pipeline_mode<synchronous>, transform_indices = @transform_6, window_bounds = array<i64: 1, 29>}, {pipeline_mode = #tpu.pipeline_mode<synchronous>, transform_indices = @transform_7, window_bounds = array<i64: 64, 2>}, {pipeline_mode = #tpu.pipeline_mode<synchronous>, transform_indices = @transform_8, window_bounds = array<i64: 32, 2>}, {transform_indices = @transform_9, window_bounds = array<i64: 2, 29>}]} {
    %c0 = arith.constant 0 : index
    %c0_0 = arith.constant 0 : index
    %c0_1 = arith.constant 0 : index
    %0 = vector.load %arg1[%c0, %c0_0, %c0_1] : memref<2x32x32xf32, #tpu.memory_space<vmem>>, vector<2x32x32xf32>
    %1 = vector.shape_cast %0 : vector<2x32x32xf32> to vector<64x32xf32>
    %cst = arith.constant 0.000000e+00 : f32
    %2 = vector.broadcast %cst : f32 to vector<64x96xf32>
    %3 = tpu.concatenate %1, %2 in 1 : vector<64x32xf32>, vector<64x96xf32> -> vector<64x128xf32>
    %c1_i32 = arith.constant 1 : i32
    %4 = tpu.dynamic_rotate %3 by %c1_i32 dim 0 : vector<64x128xf32>, i32 -> vector<64x128xf32>
    %c0_2 = arith.constant 0 : index
    %c0_3 = arith.constant 0 : index
    %5 = vector.load %arg8[%c0_2, %c0_3] : memref<64x2xf32, #tpu.memory_space<vmem>>, vector<64x1xf32>
    %6 = vector.broadcast %5 : vector<64x1xf32> to vector<64x128xf32>
    %7 = arith.mulf %4, %6 : vector<64x128xf32>
    %c63_i32 = arith.constant 63 : i32
    %8 = tpu.dynamic_rotate %3 by %c63_i32 dim 0 : vector<64x128xf32>, i32 -> vector<64x128xf32>
    %c0_4 = arith.constant 0 : index
    %c1 = arith.constant 1 : index
    %9 = vector.load %arg8[%c0_4, %c1] : memref<64x2xf32, #tpu.memory_space<vmem>>, vector<64x1xf32>
    %10 = vector.broadcast %9 : vector<64x1xf32> to vector<64x128xf32>
    %11 = arith.mulf %8, %10 : vector<64x128xf32>
    %12 = tpu.concatenate %7, %3, %11 in 1 : vector<64x128xf32>, vector<64x128xf32>, vector<64x128xf32> -> vector<64x384xf32>
    %c0_5 = arith.constant 0 : index
    %c0_6 = arith.constant 0 : index
    %13 = vector.load %arg2[%c0_5, %c0_6] : memref<384x128xf32, #tpu.memory_space<vmem>>, vector<384x128xf32>
    %cst_7 = arith.constant dense<0.000000e+00> : vector<64x128xf32>
    %14 = tpu.matmul %12, %13, %cst_7 {dimension_numbers = #tpu.dot_dimension_numbers<[1], [0], [0], [1], [0, 0, 1, 1], [], []>} : vector<64x384xf32>, vector<384x128xf32>, vector<64x128xf32> -> vector<64x128xf32>
    %c0_8 = arith.constant 0 : index
    %c0_9 = arith.constant 0 : index
    %15 = vector.load %arg3[%c0_8, %c0_9] : memref<1x128xf32, #tpu.memory_space<vmem>>, vector<1x128xf32>
    %16 = vector.broadcast %15 : vector<1x128xf32> to vector<64x128xf32>
    %17 = arith.addf %14, %16 : vector<64x128xf32>
    %cst_10 = arith.constant 0.000000e+00 : f32
    %18 = vector.broadcast %cst_10 : f32 to vector<64x128xf32>
    %19 = arith.maximumf %17, %18 : vector<64x128xf32>
    %20 = vector.shape_cast %19 : vector<64x128xf32> to vector<32x2x128xf32>
    %cst_11 = arith.constant dense<0xFF800000> : vector<32x128xf32>
    %21 = vector.multi_reduction <maximumf>, %20, %cst_11 [1] : vector<32x2x128xf32> to vector<32x128xf32>
    %c124_i32 = arith.constant 124 : i32
    %22 = tpu.dynamic_rotate %21 by %c124_i32 dim 1 : vector<32x128xf32>, i32 -> vector<32x128xf32>
    %23 = arith.maximumf %21, %22 : vector<32x128xf32>
    %c1_i32_12 = arith.constant 1 : i32
    %24 = tpu.dynamic_rotate %23 by %c1_i32_12 dim 0 : vector<32x128xf32>, i32 -> vector<32x128xf32>
    %c0_13 = arith.constant 0 : index
    %c0_14 = arith.constant 0 : index
    %25 = vector.load %arg9[%c0_13, %c0_14] : memref<32x2xf32, #tpu.memory_space<vmem>>, vector<32x1xf32>
    %26 = vector.broadcast %25 : vector<32x1xf32> to vector<32x128xf32>
    %27 = arith.mulf %24, %26 : vector<32x128xf32>
    %c31_i32 = arith.constant 31 : i32
    %28 = tpu.dynamic_rotate %23 by %c31_i32 dim 0 : vector<32x128xf32>, i32 -> vector<32x128xf32>
    %c0_15 = arith.constant 0 : index
    %c1_16 = arith.constant 1 : index
    %29 = vector.load %arg9[%c0_15, %c1_16] : memref<32x2xf32, #tpu.memory_space<vmem>>, vector<32x1xf32>
    %30 = vector.broadcast %29 : vector<32x1xf32> to vector<32x128xf32>
    %31 = arith.mulf %28, %30 : vector<32x128xf32>
    %32 = tpu.concatenate %27, %23, %31 in 1 : vector<32x128xf32>, vector<32x128xf32>, vector<32x128xf32> -> vector<32x384xf32>
    %c0_17 = arith.constant 0 : index
    %c0_18 = arith.constant 0 : index
    %33 = vector.load %arg4[%c0_17, %c0_18] : memref<384x128xf32, #tpu.memory_space<vmem>>, vector<384x128xf32>
    %cst_19 = arith.constant dense<0.000000e+00> : vector<32x128xf32>
    %34 = tpu.matmul %32, %33, %cst_19 {dimension_numbers = #tpu.dot_dimension_numbers<[1], [0], [0], [1], [0, 0, 1, 1], [], []>} : vector<32x384xf32>, vector<384x128xf32>, vector<32x128xf32> -> vector<32x128xf32>
    %c0_20 = arith.constant 0 : index
    %c0_21 = arith.constant 0 : index
    %35 = vector.load %arg5[%c0_20, %c0_21] : memref<1x128xf32, #tpu.memory_space<vmem>>, vector<1x128xf32>
    %36 = vector.broadcast %35 : vector<1x128xf32> to vector<32x128xf32>
    %37 = arith.addf %34, %36 : vector<32x128xf32>
    %cst_22 = arith.constant 0.000000e+00 : f32
    %38 = vector.broadcast %cst_22 : f32 to vector<32x128xf32>
    %39 = arith.maximumf %37, %38 : vector<32x128xf32>
    %40 = vector.shape_cast %39 : vector<32x128xf32> to vector<16x2x128xf32>
    %cst_23 = arith.constant dense<0xFF800000> : vector<16x128xf32>
    %41 = vector.multi_reduction <maximumf>, %40, %cst_23 [1] : vector<16x2x128xf32> to vector<16x128xf32>
    %c120_i32 = arith.constant 120 : i32
    %42 = tpu.dynamic_rotate %41 by %c120_i32 dim 1 : vector<16x128xf32>, i32 -> vector<16x128xf32>
    %43 = arith.maximumf %41, %42 : vector<16x128xf32>
    %44 = vector.shape_cast %43 : vector<16x128xf32> to vector<2x8x128xf32>
    %45 = vector.extract_strided_slice %44 {offsets = [0, 0, 0], sizes = [2, 1, 128], strides = [1, 1, 1]} : vector<2x8x128xf32> to vector<2x1x128xf32>
    %46 = vector.shape_cast %45 : vector<2x1x128xf32> to vector<2x128xf32>
    %47 = vector.extract_strided_slice %44 {offsets = [0, 1, 0], sizes = [2, 1, 128], strides = [1, 1, 1]} : vector<2x8x128xf32> to vector<2x1x128xf32>
    %48 = vector.shape_cast %47 : vector<2x1x128xf32> to vector<2x128xf32>
    %49 = vector.extract_strided_slice %44 {offsets = [0, 2, 0], sizes = [2, 1, 128], strides = [1, 1, 1]} : vector<2x8x128xf32> to vector<2x1x128xf32>
    %50 = vector.shape_cast %49 : vector<2x1x128xf32> to vector<2x128xf32>
    %51 = vector.extract_strided_slice %44 {offsets = [0, 3, 0], sizes = [2, 1, 128], strides = [1, 1, 1]} : vector<2x8x128xf32> to vector<2x1x128xf32>
    %52 = vector.shape_cast %51 : vector<2x1x128xf32> to vector<2x128xf32>
    %53 = vector.extract_strided_slice %44 {offsets = [0, 4, 0], sizes = [2, 1, 128], strides = [1, 1, 1]} : vector<2x8x128xf32> to vector<2x1x128xf32>
    %54 = vector.shape_cast %53 : vector<2x1x128xf32> to vector<2x128xf32>
    %55 = vector.extract_strided_slice %44 {offsets = [0, 5, 0], sizes = [2, 1, 128], strides = [1, 1, 1]} : vector<2x8x128xf32> to vector<2x1x128xf32>
    %56 = vector.shape_cast %55 : vector<2x1x128xf32> to vector<2x128xf32>
    %57 = vector.extract_strided_slice %44 {offsets = [0, 6, 0], sizes = [2, 1, 128], strides = [1, 1, 1]} : vector<2x8x128xf32> to vector<2x1x128xf32>
    %58 = vector.shape_cast %57 : vector<2x1x128xf32> to vector<2x128xf32>
    %59 = vector.extract_strided_slice %44 {offsets = [0, 7, 0], sizes = [2, 1, 128], strides = [1, 1, 1]} : vector<2x8x128xf32> to vector<2x1x128xf32>
    %60 = vector.shape_cast %59 : vector<2x1x128xf32> to vector<2x128xf32>
    %61 = tpu.concatenate %46, %48, %50, %52, %54, %56, %58, %60 in 1 : vector<2x128xf32>, vector<2x128xf32>, vector<2x128xf32>, vector<2x128xf32>, vector<2x128xf32>, vector<2x128xf32>, vector<2x128xf32>, vector<2x128xf32> -> vector<2x1024xf32>
    %c0_24 = arith.constant 0 : index
    %c0_25 = arith.constant 0 : index
    %62 = vector.load %arg6[%c0_24, %c0_25] : memref<1024x29xf32, #tpu.memory_space<vmem>>, vector<1024x29xf32>
    %cst_26 = arith.constant dense<0.000000e+00> : vector<2x29xf32>
    %63 = tpu.matmul %61, %62, %cst_26 {dimension_numbers = #tpu.dot_dimension_numbers<[1], [0], [0], [1], [0, 0, 1, 1], [], []>} : vector<2x1024xf32>, vector<1024x29xf32>, vector<2x29xf32> -> vector<2x29xf32>
    %c0_27 = arith.constant 0 : index
    %c0_28 = arith.constant 0 : index
    %64 = vector.load %arg7[%c0_27, %c0_28] : memref<1x29xf32, #tpu.memory_space<vmem>>, vector<1x29xf32>
    %65 = vector.broadcast %64 : vector<1x29xf32> to vector<2x29xf32>
    %66 = arith.addf %63, %65 : vector<2x29xf32>
    %c0_29 = arith.constant 0 : index
    %c0_30 = arith.constant 0 : index
    %67 = vector.load %arg10[%c0_29, %c0_30] : memref<2x29xf32, #tpu.memory_space<vmem>>, vector<2x29xf32>
    tpu.vector_store %arg10[%c0_29, %c0_30], %66 {strides = array<i32>} : memref<2x29xf32, #tpu.memory_space<vmem>>, vector<2x29xf32>,
    return
  }
  func.func @transform_0(%arg0: i32) -> (i32, i32, i32) {
    %c0_i32 = arith.constant 0 : i32
    %c0_i32_0 = arith.constant 0 : i32
    %c0_i32_1 = arith.constant 0 : i32
    return %arg0, %c0_i32, %c0_i32_0 : i32, i32, i32
  }
  func.func @transform_1(%arg0: i32) -> (i32, i32) {
    %c0_i32 = arith.constant 0 : i32
    %c0_i32_0 = arith.constant 0 : i32
    %c0_i32_1 = arith.constant 0 : i32
    return %c0_i32, %c0_i32_0 : i32, i32
  }
  func.func @transform_2(%arg0: i32) -> (i32, i32) {
    %c0_i32 = arith.constant 0 : i32
    %c0_i32_0 = arith.constant 0 : i32
    %c0_i32_1 = arith.constant 0 : i32
    return %c0_i32, %c0_i32_0 : i32, i32
  }
  func.func @transform_3(%arg0: i32) -> (i32, i32) {
    %c0_i32 = arith.constant 0 : i32
    %c0_i32_0 = arith.constant 0 : i32
    %c0_i32_1 = arith.constant 0 : i32
    return %c0_i32, %c0_i32_0 : i32, i32
  }
  func.func @transform_4(%arg0: i32) -> (i32, i32) {
    %c0_i32 = arith.constant 0 : i32
    %c0_i32_0 = arith.constant 0 : i32
    %c0_i32_1 = arith.constant 0 : i32
    return %c0_i32, %c0_i32_0 : i32, i32
  }
  func.func @transform_5(%arg0: i32) -> (i32, i32) {
    %c0_i32 = arith.constant 0 : i32
    %c0_i32_0 = arith.constant 0 : i32
    %c0_i32_1 = arith.constant 0 : i32
    return %c0_i32, %c0_i32_0 : i32, i32
  }
  func.func @transform_6(%arg0: i32) -> (i32, i32) {
    %c0_i32 = arith.constant 0 : i32
    %c0_i32_0 = arith.constant 0 : i32
    %c0_i32_1 = arith.constant 0 : i32
    return %c0_i32, %c0_i32_0 : i32, i32
  }
  func.func @transform_7(%arg0: i32) -> (i32, i32) {
    %c0_i32 = arith.constant 0 : i32
    %c0_i32_0 = arith.constant 0 : i32
    %c0_i32_1 = arith.constant 0 : i32
    return %c0_i32, %c0_i32_0 : i32, i32
  }
  func.func @transform_8(%arg0: i32) -> (i32, i32) {
    %c0_i32 = arith.constant 0 : i32
    %c0_i32_0 = arith.constant 0 : i32
    %c0_i32_1 = arith.constant 0 : i32
    return %c0_i32, %c0_i32_0 : i32, i32
  }
  func.func @transform_9(%arg0: i32) -> (i32, i32) {
    %c0_i32 = arith.constant 0 : i32
    %c0_i32_0 = arith.constant 0 : i32
    return %arg0, %c0_i32 : i32, i32
  }
}

</mosaic_0001>

<bundles_post_ra>
// kernel: tile.18
= control target key start
LH: loop header
LB: loop body
LE: loop exit
PB: predicated region body
PF: predicated region fallthrough
CT: control target
= control target key end

     0   :  { %2 = vsyncpa [#allocation1], 0  ;;  %s51_s8 = smov [#allocation0]   ;;  %s71_s0 = inlined_call_operand.hbm [shape: f32[8], index: 0, kind: input, shape index: {}]   ;;  %s72_s1 = inlined_call_operand.vmem [shape: f32[16,8], index: 1, kind: output, shape index: {}]  }
   0x1   :  { %s8_s0 = sshll.u32 %s71_s0, 4  ;;  %s10_s9 = sshll.u32 %s51_s8, 4  ;;  %s9_s0 = int_to_ptr.hbm [resolvable:$true] %s8_s0  ;;  %s11_s9 = int_to_ptr.vmem [resolvable:$true] %s10_s9 }
   0x2   :  { %13 = dma.hbm_to_vmem [thread:$0]  %s9_s0, 16, %s11_s9, [#allocation1]  }
   0x3   :  { %49 = dma.done.wait [#allocation1], 16  }
   0x4   :  { %50 = vsyncadd [#allocation1], 4294967280  ;;  %v18_v0 = vld [vmem:[#allocation0] ss:$0 sm:$0xff] }
   0x5   :  { %19 = vst [vmem:[%s72_s1] sm:$0xff] %v18_v0 }
   0x6   :  { %23 = vst [vmem:[%s72_s1 + $0x8] sm:$0xff] %v18_v0 }
   0x7   :  { %22 = vsyncpa [#allocation1], 1 }

// kernel: tile.13
= control target key start
LH: loop header
LB: loop body
LE: loop exit
PB: predicated region body
PF: predicated region fallthrough
CT: control target
= control target key end

     0   :  { %2 = vsyncpa [#allocation1], 0  ;;  %s57_s8 = smov [#allocation0]   ;;  %s83_s0 = inlined_call_operand.hbm [shape: f32[4], index: 0, kind: input, shape index: {}]   ;;  %s84_s1 = inlined_call_operand.vmem [shape: f32[32,4], index: 1, kind: output, shape index: {}]  }
   0x1   :  { %s8_s0 = sshll.u32 %s83_s0, 4  ;;  %s10_s9 = sshll.u32 %s57_s8, 4  ;;  %s9_s0 = int_to_ptr.hbm [resolvable:$true] %s8_s0  ;;  %s11_s9 = int_to_ptr.vmem [resolvable:$true] %s10_s9 }
   0x2   :  { %13 = dma.hbm_to_vmem [thread:$0]  %s9_s0, 16, %s11_s9, [#allocation1]  }
   0x3   :  { %55 = dma.done.wait [#allocation1], 16  }
   0x4   :  { %56 = vsyncadd [#allocation1], 4294967280  ;;  %v18_v0 = vld [vmem:[#allocation0] ss:$0 sm:$0xff] }
   0x5   :  { %19 = vst [vmem:[%s84_s1] sm:$0xff] %v18_v0 }
   0x6   :  { %27 = vst [vmem:[%s84_s1 + $0x8] sm:$0xff] %v18_v0 }
   0x7   :  { %28 = vst [vmem:[%s84_s1 + $0x10] sm:$0xff] %v18_v0 }
   0x8   :  { %29 = vst [vmem:[%s84_s1 + $0x18] sm:$0xff] %v18_v0 }
   0x9   :  { %26 = vsyncpa [#allocation1], 1 }

// kernel: tile.19
= control target key start
LH: loop header
LB: loop body
LE: loop exit
PB: predicated region body
PF: predicated region fallthrough
CT: control target
= control target key end

     0   :  { %s131_s10 = smov 120   ;;  %s132_s11 = smov 104   ;;  %vm3_vm0 = vcmask 64512   ;;  %vm9_vm1 = vcmask 1048512   ;;  %vm15_vm2 = vcmask 982912   ;;  %vm21_vm3 = vcmask 917312   ;;  %s207_s0 = inlined_call_operand.vmem [shape: f32[16,8], index: 0, kind: input, shape index: {}]   ;;  %s208_s1 = inlined_call_operand.vmem [shape: f32[1,128], index: 1, kind: output, shape index: {}]  }
   0x1   :  { %v101_v0 = vld [vmem:[%s207_s0 + $0xf] sm:$0x1]   ;;  %v103_v1 = vld [vmem:[%s207_s0 + $0xd] sm:$0x1]   ;;  %v105_v2 = vld [vmem:[%s207_s0 + $0xb] sm:$0x1]  }
   0x2   :  { %7 = vrot.lane.b32.xlu0 %v101_v0, %s131_s10  ;;  %19 = vrot.lane.b32.xlu1 %v103_v1, %s132_s11  ;;  %s133_s14 = smov 88   ;;  %v102_v3 = vld [vmem:[%s207_s0 + $0xe] sm:$0x1]   ;;  %v104_v4 = vld [vmem:[%s207_s0 + $0xc] sm:$0x1]   ;;  %s134_s19 = smov 112  }
   0x3   :  { %31 = vrot.lane.b32.xlu2 %v105_v2, %s133_s14  ;;  %s135_s20 = smov 96   ;;  %v106_v5 = vld [vmem:[%s207_s0 + $0xa] sm:$0x1]   ;;  %s136_s23 = smov 80   ;;  %v107_v6 = vld [vmem:[%s207_s0 + $0x9] sm:$0x1]  }
   0x4   :  { %v108_v7 = vld [vmem:[%s207_s0 + $0x8] sm:$0x1]   ;;  %s137_s28 = smov 72   ;;  %s138_s29 = smov 64   ;;  %v109_v8 = vld [vmem:[%s207_s0 + $0x7] sm:$0x1]  }
   0x5   :  { %s139_s3 = smov 56   ;;  %v110_v9 = vld [vmem:[%s207_s0 + $0x6] sm:$0x1]   ;;  %v111_v10 = vld [vmem:[%s207_s0 + $0x5] sm:$0x1]   ;;  %s140_s8 = smov 48  }
   0x6   :  { %s141_s9 = smov 40   ;;  %v112_v11 = vld [vmem:[%s207_s0 + $0x4] sm:$0x1]   ;;  %s142_s12 = smov 32   ;;  %v113_v12 = vld [vmem:[%s207_s0 + $0x3] sm:$0x1]  }
   0x7   :  { %v114_v13 = vld [vmem:[%s207_s0 + $0x2] sm:$0x1]   ;;  %s143_s17 = smov 24   ;;  %s144_s18 = smov 16   ;;  %v115_v14 = vld [vmem:[%s207_s0 + $0x1] sm:$0x1]  }
   0x8   :  { %s145_s21 = smov 8   ;;  %v2_v15 = vld [vmem:[%s207_s0] sm:$0x1]   ;;  %vm27_vm4 = vcmask 851712   ;;  %vm33_vm5 = vcmask 786112   ;;  %vm39_vm6 = vcmask 720512  }
   0x9   :  { %4 = vst.msk [vmem:[#allocation0] sm:$0x1] %vm3_vm0, %v2_v15   ;;  %vm45_vm7 = vcmask 654912   ;;  %vm51_vm8 = vcmask 589312   ;;  %vm57_vm9 = vcmask 523712   ;;  %vm63_vm10 = vcmask 458112  }
   0xa   :  { %13 = vrot.lane.b32.xlu0 %v102_v3, %s134_s19  ;;  %25 = vrot.lane.b32.xlu1 %v104_v4, %s135_s20  ;;  %vm69_vm11 = vcmask 392512   ;;  %vm75_vm12 = vcmask 326912   ;;  %vm81_vm13 = vcmask 261312   ;;  %vm87_vm14 = vcmask 195712  }
   0xb   :  { %37 = vrot.lane.b32.xlu2 %v106_v5, %s136_s23  ;;  %vm93_vm15 = vcmask 130112  }
  0x12   :  { %43 = vrot.lane.b32.xlu0 %v107_v6, %s137_s28  ;;  %49 = vrot.lane.b32.xlu1 %v108_v7, %s138_s29 }
  0x13   :  { %55 = vrot.lane.b32.xlu2 %v109_v8, %s139_s3 }
  0x1a   :  { %61 = vrot.lane.b32.xlu0 %v110_v9, %s140_s8  ;;  %67 = vrot.lane.b32.xlu1 %v111_v10, %s141_s9 }
  0x1b   :  { %73 = vrot.lane.b32.xlu2 %v112_v11, %s142_s12 }
  0x22   :  { %79 = vrot.lane.b32.xlu0 %v113_v12, %s143_s17  ;;  %85 = vrot.lane.b32.xlu1 %v114_v13, %s144_s18 }
  0x23   :  { %91 = vrot.lane.b32.xlu2 %v115_v14, %s145_s21 }
  0x5d   :  { %v32_v16 = vpop.permute.xlu2 %31  }
  0x65   :  { %v38_v17 = vpop.permute.xlu2 %37  }
  0x6d   :  { %v56_v18 = vpop.permute.xlu2 %55  }
  0x74   :  { %v8_v19 = vpop.permute.xlu0 %7   ;;  %v20_v20 = vpop.permute.xlu1 %19  }
  0x75   :  { %10 = vst.msk [vmem:[#allocation0] sm:$0x1] %vm9_vm1, %v8_v19   ;;  %v74_v21 = vpop.permute.xlu2 %73  }
  0x7c   :  { %v14_v22 = vpop.permute.xlu0 %13   ;;  %v26_v23 = vpop.permute.xlu1 %25  }
  0x7d   :  { %16 = vst.msk [vmem:[#allocation0] sm:$0x1] %vm15_vm2, %v14_v22   ;;  %v92_v24 = vpop.permute.xlu2 %91  }
  0x7e   :  { %22 = vst.msk [vmem:[#allocation0] sm:$0x1] %vm21_vm3, %v20_v20  }
  0x7f   :  { %28 = vst.msk [vmem:[#allocation0] sm:$0x1] %vm27_vm4, %v26_v23  }
  0x80   :  { %34 = vst.msk [vmem:[#allocation0] sm:$0x1] %vm33_vm5, %v32_v16  }
  0x81   :  { %40 = vst.msk [vmem:[#allocation0] sm:$0x1] %vm39_vm6, %v38_v17  }
  0x84   :  { %v44_v25 = vpop.permute.xlu0 %43   ;;  %v50_v26 = vpop.permute.xlu1 %49  }
  0x85   :  { %46 = vst.msk [vmem:[#allocation0] sm:$0x1] %vm45_vm7, %v44_v25  }
  0x86   :  { %52 = vst.msk [vmem:[#allocation0] sm:$0x1] %vm51_vm8, %v50_v26  }
  0x87   :  { %58 = vst.msk [vmem:[#allocation0] sm:$0x1] %vm57_vm9, %v56_v18  }
  0x8c   :  { %v62_v27 = vpop.permute.xlu0 %61   ;;  %v68_v28 = vpop.permute.xlu1 %67  }
  0x8d   :  { %64 = vst.msk [vmem:[#allocation0] sm:$0x1] %vm63_vm10, %v62_v27  }
  0x8e   :  { %70 = vst.msk [vmem:[#allocation0] sm:$0x1] %vm69_vm11, %v68_v28  }
  0x8f   :  { %76 = vst.msk [vmem:[#allocation0] sm:$0x1] %vm75_vm12, %v74_v21  }
  0x94   :  { %v80_v29 = vpop.permute.xlu0 %79   ;;  %v86_v30 = vpop.permute.xlu1 %85  }
  0x95   :  { %82 = vst.msk [vmem:[#allocation0] sm:$0x1] %vm81_vm13, %v80_v29  }
  0x96   :  { %88 = vst.msk [vmem:[#allocation0] sm:$0x1] %vm87_vm14, %v86_v30  }
  0x97   :  { %94 = vst.msk [vmem:[#allocation0] sm:$0x1] %vm93_vm15, %v92_v24  }
  0x9e   :  { %v97_v31 = vld [vmem:[#allocation0] sm:$0x1] }
  0x9f   :  { %100 = vst [vmem:[%s208_s1] sm:$0x1] %v97_v31 }

// kernel: tile.14
= control target key start
LH: loop header
LB: loop body
LE: loop exit
PB: predicated region body
PF: predicated region fallthrough
CT: control target
= control target key end

     0   :  { %s259_s10 = smov 124   ;;  %s260_s11 = smov 116   ;;  %vm3_vm0 = vcmask 31744   ;;  %vm9_vm1 = vcmask 1048544   ;;  %vm15_vm2 = vcmask 1015744   ;;  %vm21_vm3 = vcmask 982944   ;;  %s399_s0 = inlined_call_operand.vmem [shape: f32[32,4], index: 0, kind: input, shape index: {}]   ;;  %s400_s1 = inlined_call_operand.vmem [shape: f32[1,128], index: 1, kind: output, shape index: {}]  }
   0x1   :  { %v197_v0 = vld [vmem:[%s399_s0 + $0x1f] sm:$0x1]   ;;  %v199_v1 = vld [vmem:[%s399_s0 + $0x1d] sm:$0x1]   ;;  %v201_v2 = vld [vmem:[%s399_s0 + $0x1b] sm:$0x1]  }
   0x2   :  { %7 = vrot.lane.b32.xlu0 %v197_v0, %s259_s10  ;;  %19 = vrot.lane.b32.xlu1 %v199_v1, %s260_s11  ;;  %s261_s14 = smov 108   ;;  %v198_v3 = vld [vmem:[%s399_s0 + $0x1e] sm:$0x1]   ;;  %v200_v4 = vld [vmem:[%s399_s0 + $0x1c] sm:$0x1]   ;;  %s262_s19 = smov 120  }
   0x3   :  { %31 = vrot.lane.b32.xlu2 %v201_v2, %s261_s14  ;;  %s263_s20 = smov 112   ;;  %v202_v5 = vld [vmem:[%s399_s0 + $0x1a] sm:$0x1]   ;;  %s264_s23 = smov 104   ;;  %v203_v6 = vld [vmem:[%s399_s0 + $0x19] sm:$0x1]  }
   0x4   :  { %v204_v7 = vld [vmem:[%s399_s0 + $0x18] sm:$0x1]   ;;  %s265_s28 = smov 100   ;;  %s266_s29 = smov 96   ;;  %v205_v8 = vld [vmem:[%s399_s0 + $0x17] sm:$0x1]  }
   0x5   :  { %s267_s3 = smov 92   ;;  %v206_v9 = vld [vmem:[%s399_s0 + $0x16] sm:$0x1]   ;;  %v207_v10 = vld [vmem:[%s399_s0 + $0x15] sm:$0x1]   ;;  %s268_s8 = smov 88  }
   0x6   :  { %s269_s9 = smov 84   ;;  %v208_v11 = vld [vmem:[%s399_s0 + $0x14] sm:$0x1]   ;;  %s270_s12 = smov 80   ;;  %v209_v12 = vld [vmem:[%s399_s0 + $0x13] sm:$0x1]  }
   0x7   :  { %v210_v13 = vld [vmem:[%s399_s0 + $0x12] sm:$0x1]   ;;  %s271_s17 = smov 76   ;;  %s272_s18 = smov 72   ;;  %v211_v14 = vld [vmem:[%s399_s0 + $0x11] sm:$0x1]  }
   0x8   :  { %s273_s21 = smov 68   ;;  %v212_v15 = vld [vmem:[%s399_s0 + $0x10] sm:$0x1]   ;;  %v213_v16 = vld [vmem:[%s399_s0 + $0xf] sm:$0x1]   ;;  %s274_s26 = smov 64  }
   0x9   :  { %s275_s27 = smov 60   ;;  %v214_v17 = vld [vmem:[%s399_s0 + $0xe] sm:$0x1]   ;;  %s276_s30 = smov 56   ;;  %v215_v18 = vld [vmem:[%s399_s0 + $0xd] sm:$0x1]  }
   0xa   :  { %13 = vrot.lane.b32.xlu0 %v198_v3, %s262_s19  ;;  %25 = vrot.lane.b32.xlu1 %v200_v4, %s263_s20  ;;  %v216_v19 = vld [vmem:[%s399_s0 + $0xc] sm:$0x1]   ;;  %s277_s6 = smov 52   ;;  %s278_s7 = smov 48   ;;  %v217_v20 = vld [vmem:[%s399_s0 + $0xb] sm:$0x1]  }
   0xb   :  { %37 = vrot.lane.b32.xlu2 %v202_v5, %s264_s23  ;;  %s279_s10 = smov 44   ;;  %v218_v21 = vld [vmem:[%s399_s0 + $0xa] sm:$0x1]   ;;  %v219_v22 = vld [vmem:[%s399_s0 + $0x9] sm:$0x1]   ;;  %s280_s15 = smov 40  }
   0xc   :  { %s281_s16 = smov 36   ;;  %v220_v23 = vld [vmem:[%s399_s0 + $0x8] sm:$0x1]   ;;  %s282_s19 = smov 32   ;;  %v221_v24 = vld [vmem:[%s399_s0 + $0x7] sm:$0x1]  }
   0xd   :  { %v222_v25 = vld [vmem:[%s399_s0 + $0x6] sm:$0x1]   ;;  %s283_s24 = smov 28   ;;  %s284_s25 = smov 24   ;;  %v223_v26 = vld [vmem:[%s399_s0 + $0x5] sm:$0x1]  }
   0xe   :  { %v224_v27 = vld [vmem:[%s399_s0 + $0x4] sm:$0x1]   ;;  %v225_v28 = vld [vmem:[%s399_s0 + $0x3] sm:$0x1]   ;;  %s286_s4 = smov 16   ;;  %s287_s5 = smov 12  }
   0xf   :  { %v226_v29 = vld [vmem:[%s399_s0 + $0x2] sm:$0x1]   ;;  %v227_v30 = vld [vmem:[%s399_s0 + $0x1] sm:$0x1]   ;;  %s289_s11 = smov 4   ;;  %vm27_vm4 = vcmask 950144  }
  0x10   :  { %v2_v31 = vld [vmem:[%s399_s0] sm:$0x1]   ;;  %vm33_vm5 = vcmask 917344   ;;  %vm39_vm6 = vcmask 884544   ;;  %vm45_vm7 = vcmask 851744   ;;  %vm51_vm8 = vcmask 818944  }
  0x11   :  { %4 = vst.msk [vmem:[#allocation0] sm:$0x1] %vm3_vm0, %v2_v31   ;;  %vm57_vm9 = vcmask 786144   ;;  %vm63_vm10 = vcmask 753344   ;;  %vm69_vm11 = vcmask 720544   ;;  %vm75_vm12 = vcmask 687744  }
  0x12   :  { %43 = vrot.lane.b32.xlu0 %v203_v6, %s265_s28  ;;  %49 = vrot.lane.b32.xlu1 %v204_v7, %s266_s29  ;;  %s285_s28 = smov 20   ;;  %vm81_vm13 = vcmask 654944   ;;  %vm87_vm14 = vcmask 622144   ;;  %vm93_vm15 = vcmask 589344   ;;  %vm99_vm0 = vcmask 556544  }
  0x13   :  { %55 = vrot.lane.b32.xlu2 %v205_v8, %s267_s3 }
  0x1a   :  { %61 = vrot.lane.b32.xlu0 %v206_v9, %s268_s8  ;;  %67 = vrot.lane.b32.xlu1 %v207_v10, %s269_s9  ;;  %s288_s8 = smov 8  }
  0x1b   :  { %73 = vrot.lane.b32.xlu2 %v208_v11, %s270_s12 }
  0x22   :  { %79 = vrot.lane.b32.xlu0 %v209_v12, %s271_s17  ;;  %85 = vrot.lane.b32.xlu1 %v210_v13, %s272_s18 }
  0x23   :  { %91 = vrot.lane.b32.xlu2 %v211_v14, %s273_s21 }
  0x2a   :  { %97 = vrot.lane.b32.xlu0 %v212_v15, %s274_s26  ;;  %103 = vrot.lane.b32.xlu1 %v213_v16, %s275_s27 }
  0x2b   :  { %109 = vrot.lane.b32.xlu2 %v214_v17, %s276_s30 }
  0x32   :  { %115 = vrot.lane.b32.xlu0 %v215_v18, %s277_s6  ;;  %121 = vrot.lane.b32.xlu1 %v216_v19, %s278_s7 }
  0x33   :  { %127 = vrot.lane.b32.xlu2 %v217_v20, %s279_s10 }
  0x3a   :  { %133 = vrot.lane.b32.xlu0 %v218_v21, %s280_s15  ;;  %139 = vrot.lane.b32.xlu1 %v219_v22, %s281_s16 }
  0x3b   :  { %145 = vrot.lane.b32.xlu2 %v220_v23, %s282_s19 }
  0x42   :  { %151 = vrot.lane.b32.xlu0 %v221_v24, %s283_s24  ;;  %157 = vrot.lane.b32.xlu1 %v222_v25, %s284_s25 }
  0x43   :  { %163 = vrot.lane.b32.xlu2 %v223_v26, %s285_s28 }
  0x4a   :  { %169 = vrot.lane.b32.xlu0 %v224_v27, %s286_s4  ;;  %175 = vrot.lane.b32.xlu1 %v225_v28, %s287_s5 }
  0x4b   :  { %181 = vrot.lane.b32.xlu2 %v226_v29, %s288_s8 }
  0x52   :  { %187 = vrot.lane.b32.xlu0 %v227_v30, %s289_s11 }
  0x5d   :  { %v32_v32 = vpop.permute.xlu2 %31  }
  0x65   :  { %v38_v33 = vpop.permute.xlu2 %37  }
  0x6d   :  { %v56_v34 = vpop.permute.xlu2 %55  }
  0x74   :  { %v8_v35 = vpop.permute.xlu0 %7   ;;  %v20_v36 = vpop.permute.xlu1 %19  }
  0x75   :  { %10 = vst.msk [vmem:[#allocation0] sm:$0x1] %vm9_vm1, %v8_v35   ;;  %v74_v37 = vpop.permute.xlu2 %73   ;;  %vm105_vm1 = vcmask 523744  }
  0x7c   :  { %v14_v38 = vpop.permute.xlu0 %13   ;;  %v26_v39 = vpop.permute.xlu1 %25  }
  0x7d   :  { %16 = vst.msk [vmem:[#allocation0] sm:$0x1] %vm15_vm2, %v14_v38   ;;  %v92_v40 = vpop.permute.xlu2 %91   ;;  %vm111_vm2 = vcmask 490944  }
  0x7e   :  { %22 = vst.msk [vmem:[#allocation0] sm:$0x1] %vm21_vm3, %v20_v36   ;;  %vm117_vm3 = vcmask 458144  }
  0x7f   :  { %28 = vst.msk [vmem:[#allocation0] sm:$0x1] %vm27_vm4, %v26_v39   ;;  %vm123_vm4 = vcmask 425344  }
  0x80   :  { %34 = vst.msk [vmem:[#allocation0] sm:$0x1] %vm33_vm5, %v32_v32   ;;  %vm129_vm5 = vcmask 392544  }
  0x81   :  { %40 = vst.msk [vmem:[#allocation0] sm:$0x1] %vm39_vm6, %v38_v33   ;;  %vm135_vm6 = vcmask 359744  }
  0x84   :  { %v44_v41 = vpop.permute.xlu0 %43   ;;  %v50_v42 = vpop.permute.xlu1 %49  }
  0x85   :  { %46 = vst.msk [vmem:[#allocation0] sm:$0x1] %vm45_vm7, %v44_v41   ;;  %v110_v43 = vpop.permute.xlu2 %109   ;;  %vm141_vm7 = vcmask 326944  }
  0x86   :  { %52 = vst.msk [vmem:[#allocation0] sm:$0x1] %vm51_vm8, %v50_v42   ;;  %vm147_vm8 = vcmask 294144  }
  0x87   :  { %58 = vst.msk [vmem:[#allocation0] sm:$0x1] %vm57_vm9, %v56_v34   ;;  %vm153_vm9 = vcmask 261344  }
  0x8c   :  { %v62_v44 = vpop.permute.xlu0 %61   ;;  %v68_v45 = vpop.permute.xlu1 %67  }
  0x8d   :  { %64 = vst.msk [vmem:[#allocation0] sm:$0x1] %vm63_vm10, %v62_v44   ;;  %v128_v46 = vpop.permute.xlu2 %127   ;;  %vm159_vm10 = vcmask 228544  }
  0x8e   :  { %70 = vst.msk [vmem:[#allocation0] sm:$0x1] %vm69_vm11, %v68_v45   ;;  %vm165_vm11 = vcmask 195744  }
  0x8f   :  { %76 = vst.msk [vmem:[#allocation0] sm:$0x1] %vm75_vm12, %v74_v37   ;;  %vm171_vm12 = vcmask 162944  }
  0x94   :  { %v80_v47 = vpop.permute.xlu0 %79   ;;  %v86_v48 = vpop.permute.xlu1 %85  }
  0x95   :  { %82 = vst.msk [vmem:[#allocation0] sm:$0x1] %vm81_vm13, %v80_v47   ;;  %v146_v49 = vpop.permute.xlu2 %145   ;;  %vm177_vm13 = vcmask 130144  }
  0x96   :  { %88 = vst.msk [vmem:[#allocation0] sm:$0x1] %vm87_vm14, %v86_v48   ;;  %vm183_vm14 = vcmask 97344  }
  0x97   :  { %94 = vst.msk [vmem:[#allocation0] sm:$0x1] %vm93_vm15, %v92_v40   ;;  %vm189_vm15 = vcmask 64544  }
  0x9c   :  { %v98_v50 = vpop.permute.xlu0 %97   ;;  %v104_v51 = vpop.permute.xlu1 %103  }
  0x9d   :  { %100 = vst.msk [vmem:[#allocation0] sm:$0x1] %vm99_vm0, %v98_v50   ;;  %v164_v52 = vpop.permute.xlu2 %163  }
  0x9e   :  { %106 = vst.msk [vmem:[#allocation0] sm:$0x1] %vm105_vm1, %v104_v51  }
  0x9f   :  { %112 = vst.msk [vmem:[#allocation0] sm:$0x1] %vm111_vm2, %v110_v43  }
  0xa4   :  { %v116_v53 = vpop.permute.xlu0 %115   ;;  %v122_v54 = vpop.permute.xlu1 %121  }
  0xa5   :  { %118 = vst.msk [vmem:[#allocation0] sm:$0x1] %vm117_vm3, %v116_v53   ;;  %v182_v55 = vpop.permute.xlu2 %181  }
  0xa6   :  { %124 = vst.msk [vmem:[#allocation0] sm:$0x1] %vm123_vm4, %v122_v54  }
  0xa7   :  { %130 = vst.msk [vmem:[#allocation0] sm:$0x1] %vm129_vm5, %v128_v46  }
  0xac   :  { %v134_v56 = vpop.permute.xlu0 %133   ;;  %v140_v57 = vpop.permute.xlu1 %139  }
  0xad   :  { %136 = vst.msk [vmem:[#allocation0] sm:$0x1] %vm135_vm6, %v134_v56  }
  0xae   :  { %142 = vst.msk [vmem:[#allocation0] sm:$0x1] %vm141_vm7, %v140_v57  }
  0xaf   :  { %148 = vst.msk [vmem:[#allocation0] sm:$0x1] %vm147_vm8, %v146_v49  }
  0xb4   :  { %v152_v58 = vpop.permute.xlu0 %151   ;;  %v158_v59 = vpop.permute.xlu1 %157  }
  0xb5   :  { %154 = vst.msk [vmem:[#allocation0] sm:$0x1] %vm153_vm9, %v152_v58  }
  0xb6   :  { %160 = vst.msk [vmem:[#allocation0] sm:$0x1] %vm159_vm10, %v158_v59  }
  0xb7   :  { %166 = vst.msk [vmem:[#allocation0] sm:$0x1] %vm165_vm11, %v164_v52  }
  0xbc   :  { %v170_v60 = vpop.permute.xlu0 %169   ;;  %v176_v61 = vpop.permute.xlu1 %175  }
  0xbd   :  { %172 = vst.msk [vmem:[#allocation0] sm:$0x1] %vm171_vm12, %v170_v60  }
  0xbe   :  { %178 = vst.msk [vmem:[#allocation0] sm:$0x1] %vm177_vm13, %v176_v61  }
  0xbf   :  { %184 = vst.msk [vmem:[#allocation0] sm:$0x1] %vm183_vm14, %v182_v55  }
  0xc4   :  { %v188_v62 = vpop.permute.xlu0 %187  }
  0xc5   :  { %190 = vst.msk [vmem:[#allocation0] sm:$0x1] %vm189_vm15, %v188_v62  }
  0xcc   :  { %v193_v63 = vld [vmem:[#allocation0] sm:$0x1] }
  0xcd   :  { %196 = vst [vmem:[%s400_s1] sm:$0x1] %v193_v63 }

// kernel: cnn_forward.1
= control target key start
LH: loop header
LB: loop body
LE: loop exit
PB: predicated region body
PF: predicated region fallthrough
CT: control target
= control target key end

     0   :  { %v1758_v2 = vmov 1   ;;  %s3104_s0 = inlined_call_operand.vmem [shape: f32[2,32,32], index: 0, kind: input, shape index: {}]   ;;  %s3105_s1 = inlined_call_operand.vmem [shape: f32[384,128], index: 1, kind: input, shape index: {}]   ;;  %s3106_s2 = inlined_call_operand.vmem [shape: f32[1,128], index: 2, kind: input, shape index: {}]   ;;  %s3107_s3 = inlined_call_operand.vmem [shape: f32[384,128], index: 3, kind: input, shape index: {}]   ;;  %s3108_s4 = inlined_call_operand.vmem [shape: f32[1,128], index: 4, kind: input, shape index: {}]   ;;  %s3109_s5 = inlined_call_operand.vmem [shape: f32[1024,29], index: 5, kind: input, shape index: {}]   ;;  %s3110_s6 = inlined_call_operand.vmem [shape: f32[1,29], index: 6, kind: input, shape index: {}]   ;;  %s3111_s7 = inlined_call_operand.vmem [shape: f32[64,2], index: 7, kind: input, shape index: {}]   ;;  %s3112_s8 = inlined_call_operand.vmem [shape: f32[32,2], index: 8, kind: input, shape index: {}]   ;;  %s3113_s9 = inlined_call_operand.hbm [shape: f32[2,29], index: 9, kind: output, shape index: {}]  }
   0x1   :  { %v69_v0 = vld [vmem:[%s3111_s7] sm:$0xff]  ;;  %v70_v1 = vld [vmem:[%s3111_s7 + $0x8] sm:$0xff]  ;;  %1707 = vset.pattern.permute.xlu0 %v1758_v2  ;;  %1709 = vset.pattern.permute.xlu1 %v1758_v2  ;;  %v71_v3 = vld [vmem:[%s3111_s7 + $0x10] sm:$0xff] }
   0x2   :  { %143 = vperm.xlu0 %1707, %v69_v0   ;;  %147 = vperm.xlu1 %1709, %v70_v1  }
   0x3   :  { %1711 = vset.pattern.permute.xlu2 %v1758_v2 }
   0x4   :  { %14 = vsyncpa [#allocation3], 0  ;;  %151 = vperm.xlu2 %1711, %v71_v3   ;;  %v1759_v4 = vmov 0   ;;  %v229_v5 = vld [vmem:[%s3105_s1 + $0x178] sm:$0xff]  ;;  %v228_v6 = vld [vmem:[%s3105_s1 + $0x170] sm:$0xff]  ;;  %vm41_vm0 = vcmask 261120   ;;  %v58_v59 = vlaneseq }
   0x5   :  { %316 = vmatpush.msra.mxu2 %v229_v5  ;;  %v72_v7 = vld [vmem:[%s3111_s7 + $0x18] sm:$0xff]  ;;  %v73_v8 = vld [vmem:[%s3111_s7 + $0x20] sm:$0xff]  ;;  %v227_v10 = vld [vmem:[%s3105_s1 + $0x168] sm:$0xff]  ;;  %vm421_vm3 = vcmask 1041408   ;;  %vm678_vm4 = vcmask 1041409   ;;  %vm680_vm5 = vcmask 1042434  }
   0x6   :  { %v197_v9 = vld [vmem:[%s3105_s1 + $0x78] sm:$0xff]  ;;  %v196_v11 = vld [vmem:[%s3105_s1 + $0x70] sm:$0xff]  ;;  %v226_v13 = vld [vmem:[%s3105_s1 + $0x160] sm:$0xff]  ;;  %v2007_v63 = vshrl.u32 %v58_v59, 7  ;;  %vm682_vm6 = vcmask 1043459   ;;  %vm684_vm7 = vcmask 1044484  }
   0x7   :  { %317 = vmatpush.msra.mxu2 %v228_v6  ;;  %234 = vmatpush.msra.mxu0 %v197_v9  ;;  %v213_v12 = vld [vmem:[%s3105_s1 + $0xf8] sm:$0xff]  ;;  %v195_v14 = vld [vmem:[%s3105_s1 + $0x68] sm:$0xff]  ;;  %v212_v15 = vld [vmem:[%s3105_s1 + $0xf0] sm:$0xff]  ;;  %vm686_vm8 = vcmask 1045509   ;;  %vm688_vm9 = vcmask 1046534   ;;  %vm690_vm10 = vcmask 1047559  }
   0x8   :  { %v225_v16 = vld [vmem:[%s3105_s1 + $0x158] sm:$0xff]  ;;  %275 = vmatpush.msra.mxu1 %v213_v12  ;;  %v194_v17 = vld [vmem:[%s3105_s1 + $0x60] sm:$0xff]  ;;  %v211_v18 = vld [vmem:[%s3105_s1 + $0xe8] sm:$0xff]  ;;  %vm133_vm1 = vcmp.lt.s32.totalorder %v2007_v63, 7  ;;  %vm60_vm2 = vcmp.lt.s32.totalorder %v2007_v63, 1  ;;  %s1761_s24 = smov 120  }
   0x9   :  { %318 = vmatpush.msra.mxu2 %v227_v10  ;;  %235 = vmatpush.msra.mxu0 %v196_v11  ;;  %v224_v19 = vld [vmem:[%s3105_s1 + $0x150] sm:$0xff]  ;;  %v223_v21 = vld [vmem:[%s3105_s1 + $0x148] sm:$0xff]  ;;  %v193_v22 = vld [vmem:[%s3105_s1 + $0x58] sm:$0xff]  ;;  %s1762_s14 = smov [#allocation2]   ;;  %vm1676_vm11 = vcmask 230400  }
   0xa   :  { %1708 = vset.pattern.permute.xlu0 %v1759_v4  ;;  %1710 = vset.pattern.permute.xlu1 %v1759_v4  ;;  %v75_v20 = vld [vmem:[%s3111_s7 + $0x30] sm:$0xff]  ;;  %v222_v23 = vld [vmem:[%s3105_s1 + $0x140] sm:$0xff]  ;;  %v74_v25 = vld [vmem:[%s3111_s7 + $0x28] sm:$0xff]  ;;  %s1683_s15 = sshll.u32 %s1762_s14, 4  ;;  %s1684_s15 = int_to_ptr.vmem [resolvable:$true] %s1683_s15 }
   0xb   :  { %79 = vperm.xlu0 %1708, %v69_v0   ;;  %84 = vperm.xlu1 %1710, %v70_v1   ;;  %v210_v24 = vld [vmem:[%s3105_s1 + $0xe0] sm:$0xff]  ;;  %v192_v26 = vld [vmem:[%s3105_s1 + $0x50] sm:$0xff]  ;;  %v221_v27 = vld [vmem:[%s3105_s1 + $0x138] sm:$0xff] }
   0xc   :  { %1712 = vset.pattern.permute.xlu2 %v1759_v4  ;;  %319 = vmatpush.msra.mxu2 %v226_v13  ;;  %v209_v28 = vld [vmem:[%s3105_s1 + $0xd8] sm:$0xff]  ;;  %v191_v29 = vld [vmem:[%s3105_s1 + $0x48] sm:$0xff]  ;;  %v220_v30 = vld [vmem:[%s3105_s1 + $0x130] sm:$0xff] }
   0xd   :  { %89 = vperm.xlu2 %1712, %v71_v3   ;;  %236 = vmatpush.msra.mxu0 %v195_v14  ;;  %v208_v31 = vld [vmem:[%s3105_s1 + $0xd0] sm:$0xff]  ;;  %v190_v32 = vld [vmem:[%s3105_s1 + $0x40] sm:$0xff]  ;;  %v219_v33 = vld [vmem:[%s3105_s1 + $0x128] sm:$0xff] }
   0xe   :  { %276 = vmatpush.msra.mxu1 %v212_v15  ;;  %320 = vmatpush.msra.mxu2 %v225_v16  ;;  %v207_v34 = vld [vmem:[%s3105_s1 + $0xc8] sm:$0xff]  ;;  %v189_v35 = vld [vmem:[%s3105_s1 + $0x38] sm:$0xff]  ;;  %v218_v36 = vld [vmem:[%s3105_s1 + $0x120] sm:$0xff] }
   0xf   :  { %237 = vmatpush.msra.mxu0 %v194_v17  ;;  %v206_v37 = vld [vmem:[%s3105_s1 + $0xc0] sm:$0xff]  ;;  %v188_v38 = vld [vmem:[%s3105_s1 + $0x30] sm:$0xff]  ;;  %v217_v39 = vld [vmem:[%s3105_s1 + $0x118] sm:$0xff] }
  0x10   :  { %277 = vmatpush.msra.mxu1 %v211_v18  ;;  %321 = vmatpush.msra.mxu2 %v224_v19  ;;  %v205_v40 = vld [vmem:[%s3105_s1 + $0xb8] sm:$0xff]  ;;  %v216_v41 = vld [vmem:[%s3105_s1 + $0x110] sm:$0xff]  ;;  %v215_v43 = vld [vmem:[%s3105_s1 + $0x108] sm:$0xff] }
  0x11   :  { %238 = vmatpush.msra.mxu0 %v193_v22  ;;  %v76_v42 = vld [vmem:[%s3111_s7 + $0x38] sm:$0xff]  ;;  %v187_v44 = vld [vmem:[%s3105_s1 + $0x28] sm:$0xff]  ;;  %v204_v45 = vld [vmem:[%s3105_s1 + $0xb0] sm:$0xff] }
  0x12   :  { %322 = vmatpush.msra.mxu2 %v223_v21  ;;  %278 = vmatpush.msra.mxu1 %v210_v24  ;;  %v214_v46 = vld [vmem:[%s3105_s1 + $0x100] sm:$0xff]  ;;  %v203_v48 = vld [vmem:[%s3105_s1 + $0xa8] sm:$0xff]  ;;  %v185_v49 = vld [vmem:[%s3105_s1 + $0x18] sm:$0xff] }
  0x13   :  { %1713 = vset.pattern.permute.xlu1 %v1758_v2  ;;  %1714 = vset.pattern.permute.xlu0 %v1758_v2  ;;  %v186_v47 = vld [vmem:[%s3105_s1 + $0x20] sm:$0xff]  ;;  %v184_v51 = vld [vmem:[%s3105_s1 + $0x10] sm:$0xff]  ;;  %v201_v52 = vld [vmem:[%s3105_s1 + $0x98] sm:$0xff] }
  0x14   :  { %155 = vperm.xlu1 %1713, %v72_v7   ;;  %159 = vperm.xlu0 %1714, %v73_v8   ;;  %v202_v50 = vld [vmem:[%s3105_s1 + $0xa0] sm:$0xff]  ;;  %v183_v53 = vld [vmem:[%s3105_s1 + $0x8] sm:$0xff]  ;;  %v200_v54 = vld [vmem:[%s3105_s1 + $0x90] sm:$0xff] }
  0x15   :  { %94 = vperm.xlu2 %1712, %v72_v7   ;;  %323 = vmatpush.msra.mxu2 %v222_v23  ;;  %v182_v55 = vld [vmem:[%s3105_s1] sm:$0xff]  ;;  %v199_v56 = vld [vmem:[%s3105_s1 + $0x88] sm:$0xff]  ;;  %v35_v3 = vld [vmem:[%s3104_s0 + $0x10] sm:$0xff] }
  0x16   :  { %239 = vmatpush.msra.mxu0 %v192_v26  ;;  %279 = vmatpush.msra.mxu1 %v209_v28  ;;  %v198_v57 = vld [vmem:[%s3105_s1 + $0x80] sm:$0xff]  ;;  %v34_v60 = vld [vmem:[%s3104_s0 + $0x8] sm:$0xff]  ;;  %v2018_v5 = vld [vmem:[%s3104_s0 + $0x38] sm:$0xff]  ;;  %s1685_s1 = sshll.u32 %s3113_s9, 4  ;;  %s1686_s1 = int_to_ptr.hbm [resolvable:$true] %s1685_s1 }
  0x17   :  { %324 = vmatpush.msra.mxu2 %v221_v27  ;;  %v33_v58 = vld [vmem:[%s3104_s0] sm:$0xff]  ;;  %v43_v62 = vsel %vm41_vm0, %v34_v60, 0.0  ;;  %v2027_v10 = vsel %vm41_vm0, %v2018_v5, 0.0  ;;  %v36_v12 = vld [vmem:[%s3104_s0 + $0x18] sm:$0xff] }
  0x18   :  { %240 = vmatpush.msra.mxu0 %v191_v29  ;;  %280 = vmatpush.msra.mxu1 %v208_v31  ;;  %v2004_v61 = vsel %vm41_vm0, %v33_v58, 0.0  ;;  %v126_v1 = vrot.slane %v43_v62, 1  ;;  %v57_v14 = vrot.slane %v2027_v10, 7  ;;  %v45_v16 = vsel %vm41_vm0, %v36_v12, 0.0 }
  0x19   :  { %325 = vmatpush.msra.mxu2 %v220_v30  ;;  %v125_v0 = vrot.slane %v2004_v61, 1  ;;  %v50_v13 = vrot.slane %v2004_v61, 7  ;;  %v51_v22 = vrot.slane %v43_v62, 7  ;;  %v132_v59 = vrot.slane %v2027_v10, 1 }
  0x1a   :  { %241 = vmatpush.msra.mxu0 %v190_v32  ;;  %281 = vmatpush.msra.mxu1 %v207_v34  ;;  %v38_v34 = vld [vmem:[%s3104_s0 + $0x28] sm:$0xff] }
  0x1b   :  { %326 = vmatpush.msra.mxu2 %v219_v33  ;;  %v140_v6 = vsel %vm133_vm1, %v125_v0, %v126_v1  ;;  %v68_v19 = vsel %vm60_vm2, %v57_v14, %v50_v13  ;;  %v67_v27 = vsel %vm60_vm2, %v50_v13, %v51_v22 }
  0x1c   :  { %1715 = vset.pattern.permute.xlu1 %v1759_v4  ;;  %1717 = vset.pattern.permute.xlu0 %v1759_v4 }
  0x1d   :  { %99 = vperm.xlu1 %1715, %v73_v8   ;;  %109 = vperm.xlu0 %1717, %v75_v20  }
  0x1e   :  { %1716 = vset.pattern.permute.xlu2 %v1758_v2  ;;  %242 = vmatpush.msra.mxu0 %v189_v35 }
  0x1f   :  { %163 = vperm.xlu2 %1716, %v74_v25   ;;  %327 = vmatpush.msra.mxu2 %v218_v36 }
  0x20   :  { %282 = vmatpush.msra.mxu1 %v206_v37  ;;  %243 = vmatpush.msra.mxu0 %v188_v38  ;;  %v47_v38 = vsel %vm41_vm0, %v38_v34, 0.0 }
  0x21   :  { %328 = vmatpush.msra.mxu2 %v217_v39 }
  0x22   :  { %283 = vmatpush.msra.mxu1 %v205_v40  ;;  %244 = vmatpush.msra.mxu0 %v187_v44  ;;  %v53_v44 = vrot.slane %v45_v16, 7 }
  0x23   :  { %329 = vmatpush.msra.mxu2 %v216_v41  ;;  %v130_v41 = vrot.slane %v47_v38, 1 }
  0x24   :  { %284 = vmatpush.msra.mxu1 %v204_v45  ;;  %245 = vmatpush.msra.mxu0 %v186_v47 }
  0x25   :  { %104 = vperm.xlu1 %1715, %v74_v25   ;;  %330 = vmatpush.msra.mxu2 %v215_v43  ;;  %v37_v25 = vld [vmem:[%s3104_s0 + $0x20] sm:$0xff]  ;;  %v39_v43 = vld [vmem:[%s3104_s0 + $0x30] sm:$0xff] }
  0x26   :  { %285 = vmatpush.msra.mxu1 %v203_v48  ;;  %246 = vmatpush.msra.mxu0 %v185_v49  ;;  %v46_v28 = vsel %vm41_vm0, %v37_v25, 0.0  ;;  %v48_v47 = vsel %vm41_vm0, %v39_v43, 0.0 }
  0x27   :  { %167 = vperm.xlu2 %1716, %v75_v20   ;;  %331 = vmatpush.msra.mxu2 %v214_v46  ;;  %v128_v20 = vrot.slane %v45_v16, 1  ;;  %v129_v32 = vrot.slane %v46_v28, 1 }
  0x28   :  { %286 = vmatpush.msra.mxu1 %v202_v50  ;;  %247 = vmatpush.msra.mxu0 %v184_v51  ;;  %v131_v50 = vrot.slane %v48_v47, 1  ;;  %v54_v51 = vrot.slane %v46_v28, 7 }
  0x29   :  { %v137_v36 = vsel %vm133_vm1, %v128_v20, %v129_v32  ;;  %v136_v46 = vsel %vm133_vm1, %v129_v32, %v130_v41 }
  0x2a   :  { %287 = vmatpush.msra.mxu1 %v201_v52  ;;  %248 = vmatpush.msra.mxu0 %v183_v53 }
  0x2c   :  { %288 = vmatpush.msra.mxu1 %v200_v54  ;;  %249 = vmatpush.msra.mxu0 %v182_v55  ;;  %v135_v55 = vsel %vm133_vm1, %v130_v41, %v131_v50 }
  0x2d   :  { %1718 = vset.pattern.permute.xlu1 %v1758_v2 }
  0x2e   :  { %171 = vperm.xlu1 %1718, %v76_v42   ;;  %289 = vmatpush.msra.mxu1 %v199_v56  ;;  %v64_v56 = vsel %vm60_vm2, %v53_v44, %v54_v51 }
  0x2f   :  { %1719 = vset.pattern.permute.xlu2 %v1759_v4 }
  0x30   :  { %114 = vperm.xlu2 %1719, %v76_v42   ;;  %290 = vmatpush.msra.mxu1 %v198_v57 }
  0x31   :  { %1694 = vmatmul.msk.f32.vlgmr.msra.gmra.mxu1 %vm41_vm0, %v33_v58 }
  0x36   :  { %1720 = vset.pattern.permute.xlu1 %v1759_v4  ;;  %v44_v4 = vsel %vm41_vm0, %v35_v3, 0.0 }
  0x37   :  { %v127_v9 = vrot.slane %v44_v4, 1  ;;  %v52_v33 = vrot.slane %v44_v4, 7 }
  0x39   :  { %1695 = vmatmul.msk.f32.gmra.mxu1 %vm41_vm0, %v34_v60  ;;  %v139_v15 = vsel %vm133_vm1, %v126_v1, %v127_v9  ;;  %v138_v26 = vsel %vm133_vm1, %v127_v9, %v128_v20  ;;  %v66_v37 = vsel %vm60_vm2, %v51_v22, %v52_v33  ;;  %v65_v48 = vsel %vm60_vm2, %v52_v33, %v53_v44 }
  0x3a   :  { %v55_v60 = vrot.slane %v47_v38, 7  ;;  %v141_v9 = vsel %vm133_vm1, %v132_v59, %v125_v0  ;;  %v2094_v0 = vld [vmem:[%s3106_s2] ss:$0 sm:$0xff]  ;;  %s1760_s2 = smov 124  }
  0x3c   :  { %v63_v4 = vsel %vm60_vm2, %v54_v51, %v55_v60 }
  0x41   :  { %1696 = vmatmul.msk.f32.gmra.mxu1 %vm41_vm0, %v35_v3  ;;  %v134_v3 = vsel %vm133_vm1, %v131_v50, %v132_v59 }
  0x49   :  { %1697 = vmatmul.msk.f32.gmra.mxu1 %vm41_vm0, %v36_v12 }
  0x51   :  { %1698 = vmatmul.msk.f32.gmra.mxu1 %vm41_vm0, %v37_v25 }
  0x59   :  { %1699 = vmatmul.msk.f32.gmra.mxu1 %vm41_vm0, %v38_v34 }
  0x5e   :  { %v152_v17 = vpop.permute.xlu2 %151 }
  0x5f   :  { %v176_v29 = vmul.f32 %v152_v17, %v138_v26 }
  0x61   :  { %1700 = vmatmul.msk.f32.gmra.mxu1 %vm41_vm0, %v39_v43 }
  0x67   :  { %v90_v31 = vpop.permute.xlu2 %89 }
  0x68   :  { %v119_v40 = vmul.f32 %v90_v31, %v66_v37 }
  0x69   :  { %1701 = vmatmul.msk.f32.gmra.mxu1 %vm41_vm0, %v2018_v5 }
  0x6f   :  { %v95_v42 = vpop.permute.xlu2 %94 }
  0x70   :  { %v120_v52 = vmul.f32 %v95_v42, %v65_v48 }
  0x74   :  { %v144_v7 = vpop.permute.xlu0 %143  ;;  %v148_v8 = vpop.permute.xlu1 %147 }
  0x75   :  { %v174_v11 = vmul.f32 %v144_v7, %v140_v6  ;;  %v175_v18 = vmul.f32 %v148_v8, %v139_v15  ;;  %v56_v7 = vrot.slane %v48_v47, 7 }
  0x77   :  { %332 = vmatmul.f32.vlgmr.msra.gmra.mxu2 %v174_v11  ;;  %v62_v12 = vsel %vm60_vm2, %v55_v60, %v56_v7  ;;  %v61_v17 = vsel %vm60_vm2, %v56_v7, %v57_v14 }
  0x79   :  { %v164_v54 = vpop.permute.xlu2 %163 }
  0x7a   :  { %v179_v57 = vmul.f32 %v164_v54, %v135_v55 }
  0x7d   :  { %v80_v21 = vpop.permute.xlu0 %79  ;;  %v85_v24 = vpop.permute.xlu1 %84 }
  0x7e   :  { %v117_v23 = vmul.f32 %v80_v21, %v68_v19  ;;  %v118_v30 = vmul.f32 %v85_v24, %v67_v27 }
  0x7f   :  { %335 = vmatmul.f32.gmra.mxu2 %v175_v18 }
  0x80   :  { %250 = vmatmul.f32.vlgmr.msra.gmra.mxu0 %v117_v23 }
  0x81   :  { %v168_v1 = vpop.permute.xlu2 %167 }
  0x82   :  { %v180_v6 = vmul.f32 %v168_v1, %v134_v3 }
  0x86   :  { %v156_v35 = vpop.permute.xlu1 %155  ;;  %v160_v45 = vpop.permute.xlu0 %159 }
  0x87   :  { %338 = vmatmul.f32.gmra.mxu2 %v176_v29  ;;  %v177_v39 = vmul.f32 %v156_v35, %v137_v36  ;;  %v178_v49 = vmul.f32 %v160_v45, %v136_v46 }
  0x88   :  { %253 = vmatmul.f32.gmra.mxu0 %v118_v30 }
  0x8a   :  { %v115_v16 = vpop.permute.xlu2 %114 }
  0x8b   :  { %v124_v18 = vmul.f32 %v115_v16, %v61_v17 }
  0x8f   :  { %341 = vmatmul.f32.gmra.mxu2 %v177_v39  ;;  %v100_v53 = vpop.permute.xlu1 %99  ;;  %v110_v11 = vpop.permute.xlu0 %109 }
  0x90   :  { %256 = vmatmul.f32.gmra.mxu0 %v119_v40  ;;  %v121_v58 = vmul.f32 %v100_v53, %v64_v56  ;;  %v123_v15 = vmul.f32 %v110_v11, %v62_v12 }
  0x97   :  { %344 = vmatmul.f32.gmra.mxu2 %v178_v49  ;;  %v105_v62 = vpop.permute.xlu1 %104 }
  0x98   :  { %259 = vmatmul.f32.gmra.mxu0 %v120_v52  ;;  %v122_v8 = vmul.f32 %v105_v62, %v63_v4 }
  0x9f   :  { %347 = vmatmul.f32.gmra.mxu2 %v179_v57 }
  0xa0   :  { %262 = vmatmul.f32.gmra.mxu0 %v121_v58  ;;  %v172_v5 = vpop.permute.xlu1 %171 }
  0xa1   :  { %v181_v13 = vmul.f32 %v172_v5, %v141_v9 }
  0xa7   :  { %350 = vmatmul.f32.gmra.mxu2 %v180_v6 }
  0xa8   :  { %265 = vmatmul.f32.gmra.mxu0 %v122_v8 }
  0xae   :  { %v292_v61 = vpop.f32.mrf.mxu1 }
  0xaf   :  { %353 = vmatmul.f32.gmra.mxu2 %v181_v13 }
  0xb0   :  { %268 = vmatmul.f32.gmra.mxu0 %v123_v15 }
  0xb6   :  { %v295_v21 = vpop.f32.mrf.mxu1 }
  0xb8   :  { %271 = vmatmul.f32.gmra.mxu0 %v124_v18 }
  0xbe   :  { %v298_v32 = vpop.f32.mrf.mxu1 }
  0xc6   :  { %v301_v6 = vpop.f32.mrf.mxu1 }
  0xfa   :  { %v333_v19 = vpop.f32.mrf.mxu2 }
  0xfd   :  { %v251_v20 = vpop.f32.mrf.mxu0 }
  0xfe   :  { %v252_v22 = vadd.f32 %v2094_v0, %v251_v20 }
 0x100   :  { %v293_v23 = vadd.f32 %v292_v61, %v252_v22 }
 0x102   :  { %v334_v24 = vadd.f32 %v333_v19, %v293_v23  ;;  %v336_v25 = vpop.f32.mrf.mxu2 }
 0x104   :  { %v357_v10 = vmax.f32 %v334_v24, 0.0 }
 0x105   :  { %v254_v26 = vpop.f32.mrf.mxu0 }
 0x106   :  { %v373_v14 = vrot.slane %v357_v10, 2  ;;  %v374_v27 = vrot.slane %v357_v10, 4  ;;  %v375_v28 = vrot.slane %v357_v10, 6  ;;  %v422_v29 = vsel %vm421_vm3, %v357_v10, -inf }
 0x107   :  { %v423_v30 = vrot.slane %v422_v29, 4  ;;  %v255_v31 = vadd.f32 %v2094_v0, %v254_v26 }
 0x108   :  { %v429_v33 = vsel %vm421_vm3, %v373_v14, -inf  ;;  %v436_v34 = vsel %vm421_vm3, %v374_v27, -inf  ;;  %v443_v35 = vsel %vm421_vm3, %v375_v28, -inf }
 0x109   :  { %v424_v36 = vmax.f32 %v422_v29, %v423_v30  ;;  %v430_v37 = vrot.slane %v429_v33, 4  ;;  %v437_v38 = vrot.slane %v436_v34, 4  ;;  %v444_v39 = vrot.slane %v443_v35, 4 }
 0x10a   :  { %v296_v40 = vadd.f32 %v295_v21, %v255_v31  ;;  %v339_v45 = vpop.f32.mrf.mxu2 }
 0x10b   :  { %v425_v41 = vrot.slane %v424_v36, 2  ;;  %v431_v42 = vmax.f32 %v429_v33, %v430_v37  ;;  %v438_v43 = vmax.f32 %v436_v34, %v437_v38  ;;  %v445_v44 = vmax.f32 %v443_v35, %v444_v39 }
 0x10c   :  { %v337_v46 = vadd.f32 %v336_v25, %v296_v40 }
 0x10d   :  { %v426_v47 = vmax.f32 %v424_v36, %v425_v41  ;;  %v432_v48 = vrot.slane %v431_v42, 2  ;;  %v439_v49 = vrot.slane %v438_v43, 2  ;;  %v446_v50 = vrot.slane %v445_v44, 2  ;;  %v257_v51 = vpop.f32.mrf.mxu0 }
 0x10e   :  { %v358_v52 = vmax.f32 %v337_v46, 0.0  ;;  %v258_v53 = vadd.f32 %v2094_v0, %v257_v51 }
 0x10f   :  { %v427_v54 = vrot.slane %v426_v47, 1  ;;  %v433_v55 = vmax.f32 %v431_v42, %v432_v48  ;;  %v440_v56 = vmax.f32 %v438_v43, %v439_v49  ;;  %v447_v57 = vmax.f32 %v445_v44, %v446_v50 }
 0x110   :  { %v376_v58 = vrot.slane %v358_v52, 2  ;;  %v377_v59 = vrot.slane %v358_v52, 4  ;;  %v378_v60 = vrot.slane %v358_v52, 6  ;;  %v450_v62 = vsel %vm421_vm3, %v358_v52, -inf }
 0x111   :  { %v434_v1 = vrot.slane %v433_v55, 1  ;;  %v441_v3 = vrot.slane %v440_v56, 1  ;;  %v451_v4 = vrot.slane %v450_v62, 4  ;;  %v299_v5 = vadd.f32 %v298_v32, %v258_v53 }
 0x112   :  { %v457_v7 = vsel %vm421_vm3, %v376_v58, -inf  ;;  %v464_v8 = vsel %vm421_vm3, %v377_v59, -inf  ;;  %v448_v9 = vrot.slane %v447_v57, 1  ;;  %v2108_v16 = vmax.f32 %v426_v47, %v427_v54  ;;  %v342_v21 = vpop.f32.mrf.mxu2  ;;  %v304_v47 = vpop.f32.mrf.mxu1 }
 0x113   :  { %v2106_v11 = vmax.f32 %v433_v55, %v434_v1  ;;  %v452_v12 = vmax.f32 %v450_v62, %v451_v4  ;;  %v458_v13 = vrot.slane %v457_v7, 4  ;;  %v465_v15 = vrot.slane %v464_v8, 4 }
 0x114   :  { %v340_v17 = vadd.f32 %v339_v45, %v299_v5  ;;  %v2110_v18 = vmax.f32 %v440_v56, %v441_v3  ;;  %v471_v61 = vsel %vm421_vm3, %v378_v60, -inf  ;;  %v2114_v26 = vmax.f32 %v447_v57, %v448_v9 }
 0x115   :  { %v453_v19 = vrot.slane %v452_v12, 2  ;;  %v459_v20 = vmax.f32 %v457_v7, %v458_v13  ;;  %v260_v22 = vpop.f32.mrf.mxu0  ;;  %v466_v23 = vmax.f32 %v464_v8, %v465_v15  ;;  %v472_v24 = vrot.slane %v471_v61, 4 }
 0x116   :  { %v359_v25 = vmax.f32 %v340_v17, 0.0  ;;  %v261_v10 = vadd.f32 %v2094_v0, %v260_v22  ;;  %v2119_v14 = vsel %vm678_vm4, %v2106_v11, %v2108_v16 }
 0x117   :  { %v454_v27 = vmax.f32 %v452_v12, %v453_v19  ;;  %v460_v28 = vrot.slane %v459_v20, 2  ;;  %v467_v29 = vrot.slane %v466_v23, 2  ;;  %v2121_v30 = vmax.f32 %v471_v61, %v472_v24 }
 0x118   :  { %v379_v31 = vrot.slane %v359_v25, 2  ;;  %v380_v32 = vrot.slane %v359_v25, 4  ;;  %v381_v33 = vrot.slane %v359_v25, 6  ;;  %v478_v34 = vsel %vm421_vm3, %v359_v25, -inf }
 0x119   :  { %v479_v35 = vrot.slane %v478_v34, 4  ;;  %v302_v36 = vadd.f32 %v301_v6, %v261_v10  ;;  %v455_v37 = vrot.slane %v454_v27, 1  ;;  %v461_v38 = vmax.f32 %v459_v20, %v460_v28 }
 0x11a   :  { %v485_v39 = vsel %vm421_vm3, %v379_v31, -inf  ;;  %v492_v40 = vsel %vm421_vm3, %v380_v32, -inf  ;;  %v499_v41 = vsel %vm421_vm3, %v381_v33, -inf  ;;  %v468_v42 = vmax.f32 %v466_v23, %v467_v29  ;;  %v345_v6 = vpop.f32.mrf.mxu2 }
 0x11b   :  { %v480_v43 = vmax.f32 %v478_v34, %v479_v35  ;;  %v486_v44 = vrot.slane %v485_v39, 4  ;;  %v493_v45 = vrot.slane %v492_v40, 4  ;;  %v500_v46 = vrot.slane %v499_v41, 4  ;;  %v307_v35 = vpop.f32.mrf.mxu1 }
 0x11c   :  { %v343_v48 = vadd.f32 %v342_v21, %v302_v36  ;;  %v2127_v49 = vmax.f32 %v454_v27, %v455_v37  ;;  %v462_v50 = vrot.slane %v461_v38, 1  ;;  %v469_v51 = vrot.slane %v468_v42, 1 }
 0x11d   :  { %v481_v52 = vrot.slane %v480_v43, 2  ;;  %v487_v53 = vmax.f32 %v485_v39, %v486_v44  ;;  %v494_v54 = vmax.f32 %v492_v40, %v493_v45  ;;  %v501_v55 = vmax.f32 %v499_v41, %v500_v46  ;;  %v263_v56 = vpop.f32.mrf.mxu0 }
 0x11e   :  { %v2129_v57 = vmax.f32 %v343_v48, 0.0  ;;  %v264_v58 = vadd.f32 %v2094_v0, %v263_v56  ;;  %v2132_v59 = vmax.f32 %v461_v38, %v462_v50  ;;  %v2134_v60 = vmax.f32 %v468_v42, %v469_v51 }
 0x11f   :  { %v482_v62 = vmax.f32 %v480_v43, %v481_v52  ;;  %v488_v1 = vrot.slane %v487_v53, 2  ;;  %v495_v3 = vrot.slane %v494_v54, 2  ;;  %v502_v4 = vrot.slane %v501_v55, 2 }
 0x120   :  { %v382_v7 = vrot.slane %v2129_v57, 2  ;;  %v383_v8 = vrot.slane %v2129_v57, 4  ;;  %v384_v5 = vrot.slane %v2129_v57, 6  ;;  %v506_v9 = vsel %vm421_vm3, %v2129_v57, -inf }
 0x121   :  { %v483_v12 = vrot.slane %v482_v62, 1  ;;  %v489_v13 = vmax.f32 %v487_v53, %v488_v1  ;;  %v496_v15 = vmax.f32 %v494_v54, %v495_v3  ;;  %v503_v17 = vmax.f32 %v501_v55, %v502_v4 }
 0x122   :  { %v507_v61 = vrot.slane %v506_v9, 4  ;;  %v513_v19 = vsel %vm421_vm3, %v382_v7, -inf  ;;  %v2143_v20 = vsel %vm421_vm3, %v383_v8, -inf  ;;  %v305_v21 = vadd.f32 %v304_v47, %v264_v58  ;;  %v348_v51 = vpop.f32.mrf.mxu2 }
 0x123   :  { %v2145_v22 = vmax.f32 %v482_v62, %v483_v12  ;;  %v490_v23 = vrot.slane %v489_v13, 1  ;;  %v497_v24 = vrot.slane %v496_v15, 1  ;;  %v514_v25 = vrot.slane %v513_v19, 4 }
 0x124   :  { %v508_v10 = vmax.f32 %v506_v9, %v507_v61  ;;  %v521_v27 = vrot.slane %v2143_v20, 4  ;;  %v346_v28 = vadd.f32 %v345_v6, %v305_v21  ;;  %v474_v29 = vrot.slane %v2121_v30, 2 }
 0x125   :  { %v2149_v31 = vmax.f32 %v489_v13, %v490_v23  ;;  %v515_v32 = vmax.f32 %v513_v19, %v514_v25  ;;  %v681_v33 = vsel %vm680_vm5, %v2110_v18, %v2119_v14  ;;  %v266_v34 = vpop.f32.mrf.mxu0  ;;  %v2154_v36 = vmax.f32 %v496_v15, %v497_v24 }
 0x126   :  { %v509_v37 = vrot.slane %v508_v10, 2  ;;  %v361_v38 = vmax.f32 %v346_v28, 0.0  ;;  %v475_v39 = vmax.f32 %v2121_v30, %v474_v29  ;;  %v683_v40 = vsel %vm682_vm6, %v2114_v26, %v681_v33  ;;  %v310_v28 = vpop.f32.mrf.mxu1 }
 0x127   :  { %v685_v41 = vsel %vm684_vm7, %v2127_v49, %v683_v40  ;;  %v267_v42 = vadd.f32 %v2094_v0, %v266_v34  ;;  %v504_v43 = vrot.slane %v503_v17, 1  ;;  %v516_v44 = vrot.slane %v515_v32, 2 }
 0x128   :  { %v510_v45 = vmax.f32 %v508_v10, %v509_v37  ;;  %v385_v14 = vrot.slane %v361_v38, 2  ;;  %v386_v46 = vrot.slane %v361_v38, 4  ;;  %v387_v47 = vrot.slane %v361_v38, 6 }
 0x129   :  { %v534_v48 = vsel %vm421_vm3, %v361_v38, -inf  ;;  %v476_v50 = vrot.slane %v475_v39, 1  ;;  %v687_v30 = vsel %vm686_vm8, %v2132_v59, %v685_v41  ;;  %v308_v52 = vadd.f32 %v307_v35, %v267_v42 }
 0x12a   :  { %v535_v53 = vrot.slane %v534_v48, 4  ;;  %v541_v54 = vsel %vm421_vm3, %v385_v14, -inf  ;;  %v548_v55 = vsel %vm421_vm3, %v386_v46, -inf  ;;  %v555_v56 = vsel %vm421_vm3, %v387_v47, -inf }
 0x12b   :  { %v542_v58 = vrot.slane %v541_v54, 4  ;;  %v549_v62 = vrot.slane %v548_v55, 4  ;;  %v556_v1 = vrot.slane %v555_v56, 4  ;;  %v2168_v3 = vmax.f32 %v475_v39, %v476_v50  ;;  %v351_v50 = vpop.f32.mrf.mxu2 }
 0x12c   :  { %v536_v4 = vmax.f32 %v534_v48, %v535_v53  ;;  %v689_v6 = vsel %vm688_vm9, %v2134_v60, %v687_v30  ;;  %v349_v7 = vadd.f32 %v348_v51, %v308_v52  ;;  %v2172_v8 = vmax.f32 %v503_v17, %v504_v43 }
 0x12d   :  { %v543_v9 = vmax.f32 %v541_v54, %v542_v58  ;;  %v550_v12 = vmax.f32 %v548_v55, %v549_v62  ;;  %v557_v13 = vmax.f32 %v555_v56, %v556_v1  ;;  %v691_v15 = vsel %vm690_vm10, %v2168_v3, %v689_v6  ;;  %v269_v61 = vpop.f32.mrf.mxu0 }
 0x12e   :  { %v537_v19 = vrot.slane %v536_v4, 2  ;;  %717 = vrot.lane.b32.xlu1 %v691_v15, %s1760_s2  ;;  %v2177_v21 = vmax.f32 %v349_v7, 0.0  ;;  %v270_v23 = vadd.f32 %v2094_v0, %v269_v61  ;;  %v511_v24 = vrot.slane %v510_v45, 1 }
 0x12f   :  { %v544_v25 = vrot.slane %v543_v9, 2  ;;  %v551_v10 = vrot.slane %v550_v12, 2  ;;  %v558_v17 = vrot.slane %v557_v13, 2  ;;  %v517_v29 = vmax.f32 %v515_v32, %v516_v44 }
 0x130   :  { %v538_v33 = vmax.f32 %v536_v4, %v537_v19  ;;  %v388_v34 = vrot.slane %v2177_v21, 2  ;;  %v389_v35 = vrot.slane %v2177_v21, 4  ;;  %v390_v37 = vrot.slane %v2177_v21, 6 }
 0x131   :  { %v545_v38 = vmax.f32 %v543_v9, %v544_v25  ;;  %v552_v39 = vmax.f32 %v550_v12, %v551_v10  ;;  %v2183_v40 = vmax.f32 %v557_v13, %v558_v17  ;;  %v562_v41 = vsel %vm421_vm3, %v2177_v21, -inf }
 0x132   :  { %v539_v42 = vrot.slane %v538_v33, 1  ;;  %v563_v43 = vrot.slane %v562_v41, 4  ;;  %v569_v14 = vsel %vm421_vm3, %v388_v34, -inf  ;;  %v2189_v32 = vsel %vm421_vm3, %v389_v35, -inf }
 0x133   :  { %v546_v44 = vrot.slane %v545_v38, 1  ;;  %v553_v46 = vrot.slane %v552_v39, 1  ;;  %v570_v47 = vrot.slane %v569_v14, 4  ;;  %v577_v48 = vrot.slane %v2189_v32, 4 }
 0x134   :  { %v2192_v30 = vmax.f32 %v538_v33, %v539_v42  ;;  %v564_v51 = vmax.f32 %v562_v41, %v563_v43  ;;  %v311_v52 = vadd.f32 %v310_v28, %v270_v23  ;;  %v2194_v53 = vmax.f32 %v510_v45, %v511_v24  ;;  %v313_v23 = vpop.f32.mrf.mxu1 }
 0x135   :  { %v2196_v54 = vmax.f32 %v545_v38, %v546_v44  ;;  %v2198_v55 = vmax.f32 %v569_v14, %v570_v47  ;;  %v518_v56 = vrot.slane %v517_v29, 1  ;;  %v522_v58 = vmax.f32 %v2143_v20, %v521_v27  ;;  %v272_v62 = vpop.f32.mrf.mxu0 }
 0x136   :  { %v565_v1 = vrot.slane %v564_v51, 2  ;;  %v352_v4 = vadd.f32 %v351_v50, %v311_v52  ;;  %v527_v6 = vsel %vm421_vm3, %v384_v5, -inf  ;;  %v692_v45 = vsel %vm678_vm4, %v2149_v31, %v2145_v22 }
 0x137   :  { %v2209_v7 = vmax.f32 %v517_v29, %v518_v56  ;;  %v523_v9 = vrot.slane %v522_v58, 2  ;;  %v528_v12 = vrot.slane %v527_v6, 4  ;;  %v693_v13 = vsel %vm680_vm5, %v2154_v36, %v692_v45 }
 0x138   :  { %v2213_v15 = vmax.f32 %v564_v51, %v565_v1  ;;  %v363_v20 = vmax.f32 %v352_v4, 0.0  ;;  %v694_v27 = vsel %vm682_vm6, %v2172_v8, %v693_v13  ;;  %v273_v57 = vadd.f32 %v2094_v0, %v272_v62  ;;  %v354_v0 = vpop.f32.mrf.mxu2 }
 0x139   :  { %v524_v5 = vmax.f32 %v522_v58, %v523_v9  ;;  %v529_v61 = vmax.f32 %v527_v6, %v528_v12  ;;  %v695_v19 = vsel %vm684_vm7, %v2194_v53, %v694_v27  ;;  %v2220_v24 = vmax.f32 %v552_v39, %v553_v46 }
 0x13a   :  { %v391_v25 = vrot.slane %v363_v20, 2  ;;  %v392_v10 = vrot.slane %v363_v20, 4  ;;  %v393_v17 = vrot.slane %v363_v20, 6  ;;  %v590_v28 = vsel %vm421_vm3, %v363_v20, -inf }
 0x13b   :  { %v591_v29 = vrot.slane %v590_v28, 4  ;;  %v525_v33 = vrot.slane %v524_v5, 1  ;;  %v530_v34 = vrot.slane %v529_v61, 2  ;;  %v696_v35 = vsel %vm686_vm8, %v2209_v7, %v695_v19 }
 0x13c   :  { %v597_v38 = vsel %vm421_vm3, %v391_v25, -inf  ;;  %v604_v41 = vsel %vm421_vm3, %v392_v10, -inf  ;;  %v611_v42 = vsel %vm421_vm3, %v393_v17, -inf  ;;  %v314_v39 = vadd.f32 %v313_v23, %v273_v57 }
 0x13d   :  { %v592_v43 = vmax.f32 %v590_v28, %v591_v29  ;;  %v598_v14 = vrot.slane %v597_v38, 4  ;;  %v605_v44 = vrot.slane %v604_v41, 4  ;;  %v612_v46 = vrot.slane %v611_v42, 4 }
 0x13e   :  { %v2228_v47 = vmax.f32 %v524_v5, %v525_v33  ;;  %v531_v50 = vmax.f32 %v529_v61, %v530_v34  ;;  %v355_v51 = vadd.f32 %v354_v0, %v314_v39  ;;  %v560_v52 = vrot.slane %v2183_v40, 1 }
 0x13f   :  { %v593_v56 = vrot.slane %v592_v43, 2  ;;  %v599_v58 = vmax.f32 %v597_v38, %v598_v14  ;;  %v606_v62 = vmax.f32 %v604_v41, %v605_v44  ;;  %v613_v1 = vmax.f32 %v611_v42, %v612_v46 }
 0x140   :  { %v532_v4 = vrot.slane %v531_v50, 1  ;;  %v697_v6 = vsel %vm688_vm9, %v2228_v47, %v696_v35  ;;  %v364_v45 = vmax.f32 %v355_v51, 0.0  ;;  %v2234_v9 = vmax.f32 %v2183_v40, %v560_v52 }
 0x141   :  { %v594_v12 = vmax.f32 %v592_v43, %v593_v56  ;;  %v600_v13 = vrot.slane %v599_v58, 2  ;;  %v607_v20 = vrot.slane %v606_v62, 2  ;;  %v614_v27 = vrot.slane %v613_v1, 2 }
 0x142   :  { %v2236_v57 = vmax.f32 %v531_v50, %v532_v4  ;;  %v394_v5 = vrot.slane %v364_v45, 2  ;;  %v395_v61 = vrot.slane %v364_v45, 4  ;;  %v396_v19 = vrot.slane %v364_v45, 6 }
 0x143   :  { %v595_v23 = vrot.slane %v594_v12, 1  ;;  %v601_v25 = vmax.f32 %v599_v58, %v600_v13  ;;  %v608_v10 = vmax.f32 %v606_v62, %v607_v20  ;;  %v615_v17 = vmax.f32 %v613_v1, %v614_v27 }
 0x144   :  { %v698_v28 = vsel %vm690_vm10, %v2236_v57, %v697_v6  ;;  %v618_v29 = vsel %vm421_vm3, %v364_v45, -inf  ;;  %v625_v40 = vsel %vm421_vm3, %v394_v5, -inf  ;;  %v632_v33 = vsel %vm421_vm3, %v395_v61, -inf }
 0x145   :  { %v2243_v34 = vmax.f32 %v594_v12, %v595_v23  ;;  %v602_v35 = vrot.slane %v601_v25, 1  ;;  %v609_v0 = vrot.slane %v608_v10, 1  ;;  %719 = vrot.lane.b32.xlu0 %v698_v28, %s1760_s2  ;;  %v619_v38 = vrot.slane %v618_v29, 4 }
 0x146   :  { %v626_v41 = vrot.slane %v625_v40, 4  ;;  %v633_v42 = vrot.slane %v632_v33, 4  ;;  %v639_v39 = vsel %vm421_vm3, %v396_v19, -inf  ;;  %v567_v43 = vrot.slane %v2213_v15, 1 }
 0x147   :  { %v2248_v14 = vmax.f32 %v601_v25, %v602_v35  ;;  %v620_v44 = vmax.f32 %v618_v29, %v619_v38  ;;  %v640_v46 = vrot.slane %v639_v39, 4  ;;  %v572_v50 = vrot.slane %v2198_v55, 2 }
 0x148   :  { %v627_v51 = vmax.f32 %v625_v40, %v626_v41  ;;  %v634_v52 = vmax.f32 %v632_v33, %v633_v42  ;;  %v2252_v56 = vmax.f32 %v2213_v15, %v567_v43  ;;  %v578_v58 = vmax.f32 %v2189_v32, %v577_v48  ;;  %v922_v15 = vld [vmem:[%s3112_s8 + $0x8] sm:$0xff] }
 0x149   :  { %v621_v62 = vrot.slane %v620_v44, 2  ;;  %v573_v1 = vmax.f32 %v2198_v55, %v572_v50  ;;  %v583_v4 = vsel %vm421_vm3, %v390_v37, -inf  ;;  %v699_v6 = vsel %vm678_vm4, %v2196_v54, %v2192_v30 }
 0x14a   :  { %v628_v45 = vrot.slane %v627_v51, 2  ;;  %v579_v12 = vrot.slane %v578_v58, 2  ;;  %v584_v13 = vrot.slane %v583_v4, 4  ;;  %v700_v32 = vsel %vm680_vm5, %v2220_v24, %v699_v6 }
 0x14b   :  { %v622_v48 = vmax.f32 %v620_v44, %v621_v62  ;;  %v574_v55 = vrot.slane %v573_v1, 1  ;;  %v701_v21 = vsel %vm682_vm6, %v2234_v9, %v700_v32  ;;  %v2271_v37 = vmax.f32 %v608_v10, %v609_v0 }
 0x14c   :  { %v580_v20 = vmax.f32 %v578_v58, %v579_v12  ;;  %v585_v27 = vmax.f32 %v583_v4, %v584_v13  ;;  %v702_v5 = vsel %vm684_vm7, %v2252_v56, %v701_v21  ;;  %v616_v61 = vrot.slane %v615_v17, 1 }
 0x14d   :  { %932 = vperm.xlu0 %1717, %v922_v15   ;;  %v623_v19 = vrot.slane %v622_v48, 1  ;;  %v2275_v23 = vmax.f32 %v573_v1, %v574_v55  ;;  %v629_v25 = vmax.f32 %v627_v51, %v628_v45  ;;  %v635_v28 = vrot.slane %v634_v52, 2  ;;  %v921_v1 = vld [vmem:[%s3112_s8] sm:$0xff] }
 0x14e   :  { %v581_v29 = vrot.slane %v580_v20, 1  ;;  %v586_v40 = vrot.slane %v585_v27, 2  ;;  %v2277_v33 = vmax.f32 %v615_v17, %v616_v61  ;;  %v641_v35 = vmax.f32 %v639_v39, %v640_v46  ;;  %v1023_v61 = vld [vmem:[%s3107_s3 + $0x170] sm:$0xff] }
 0x14f   :  { %v703_v10 = vsel %vm686_vm8, %v2275_v23, %v702_v5  ;;  %v2281_v0 = vmax.f32 %v622_v48, %v623_v19  ;;  %v630_v38 = vrot.slane %v629_v25, 1  ;;  %v636_v41 = vmax.f32 %v634_v52, %v635_v28  ;;  %v1024_v5 = vld [vmem:[%s3107_s3 + $0x178] sm:$0xff]  ;;  %v1022_v19 = vld [vmem:[%s3107_s3 + $0x168] sm:$0xff]  ;;  %v1021_v28 = vld [vmem:[%s3107_s3 + $0x160] sm:$0xff] }
 0x150   :  { %v2283_v42 = vmax.f32 %v580_v20, %v581_v29  ;;  %v587_v43 = vmax.f32 %v585_v27, %v586_v40  ;;  %v642_v44 = vrot.slane %v641_v35, 2  ;;  %v706_v50 = vsel %vm678_vm4, %v2248_v14, %v2243_v34  ;;  %v923_v20 = vld [vmem:[%s3112_s8 + $0x10] sm:$0xff]  ;;  %v924_v27 = vld [vmem:[%s3112_s8 + $0x18] sm:$0xff]  ;;  %1087 = vmatpush.msrb.mxu0 %v1024_v5 }
 0x151   :  { %v2288_v51 = vmax.f32 %v629_v25, %v630_v38  ;;  %v637_v17 = vrot.slane %v636_v41, 1  ;;  %v707_v39 = vsel %vm680_vm5, %v2271_v37, %v706_v50  ;;  %v990_v25 = vld [vmem:[%s3107_s3 + $0x68] sm:$0xff]  ;;  %v1020_v29 = vld [vmem:[%s3107_s3 + $0x158] sm:$0xff]  ;;  %v1019_v40 = vld [vmem:[%s3107_s3 + $0x150] sm:$0xff] }
 0x152   :  { %v588_v46 = vrot.slane %v587_v43, 1  ;;  %v643_v58 = vmax.f32 %v641_v35, %v642_v44  ;;  %v708_v62 = vsel %vm682_vm6, %v2277_v33, %v707_v39  ;;  %v704_v52 = vsel %vm688_vm9, %v2283_v42, %v703_v10  ;;  %1088 = vmatpush.msrb.mxu0 %v1023_v61  ;;  %v1018_v35 = vld [vmem:[%s3107_s3 + $0x148] sm:$0xff]  ;;  %v989_v10 = vld [vmem:[%s3107_s3 + $0x60] sm:$0xff]  ;;  %v987_v44 = vld [vmem:[%s3107_s3 + $0x50] sm:$0xff] }
 0x153   :  { %v2299_v4 = vmax.f32 %v636_v41, %v637_v17  ;;  %v709_v6 = vsel %vm684_vm7, %v2281_v0, %v708_v62  ;;  %v1017_v38 = vld [vmem:[%s3107_s3 + $0x140] sm:$0xff]  ;;  %v988_v41 = vld [vmem:[%s3107_s3 + $0x58] sm:$0xff]  ;;  %v1015_v50 = vld [vmem:[%s3107_s3 + $0x130] sm:$0xff] }
 0x154   :  { %v2303_v45 = vmax.f32 %v587_v43, %v588_v46  ;;  %v644_v12 = vrot.slane %v643_v58, 1  ;;  %v710_v13 = vsel %vm686_vm8, %v2288_v51, %v709_v6  ;;  %1089 = vmatpush.msrb.mxu0 %v1022_v19  ;;  %v1016_v43 = vld [vmem:[%s3107_s3 + $0x138] sm:$0xff]  ;;  %v986_v39 = vld [vmem:[%s3107_s3 + $0x48] sm:$0xff]  ;;  %v983_v5 = vld [vmem:[%s3107_s3 + $0x30] sm:$0xff] }
 0x155   :  { %1721 = vset.pattern.permute.xlu0 %v1758_v2  ;;  %v711_v32 = vsel %vm688_vm9, %v2299_v4, %v710_v13  ;;  %v1014_v6 = vld [vmem:[%s3107_s3 + $0x128] sm:$0xff]  ;;  %v1011_v61 = vld [vmem:[%s3107_s3 + $0x110] sm:$0xff] }
 0x156   :  { %v705_v48 = vsel %vm690_vm10, %v2303_v45, %v704_v52  ;;  %958 = vperm.xlu0 %1721, %v921_v1   ;;  %v2312_v55 = vmax.f32 %v643_v58, %v644_v12  ;;  %1090 = vmatpush.msrb.mxu0 %v1021_v28  ;;  %v985_v12 = vld [vmem:[%s3107_s3 + $0x40] sm:$0xff]  ;;  %v1010_v28 = vld [vmem:[%s3107_s3 + $0x108] sm:$0xff] }
 0x157   :  { %721 = vrot.lane.b32.xlu1 %v705_v48, %s1760_s2 }
 0x158   :  { %v712_v21 = vsel %vm690_vm10, %v2312_v55, %v711_v32  ;;  %1091 = vmatpush.msrb.mxu0 %v1020_v29 }
 0x159   :  { %723 = vrot.lane.b32.xlu2 %v712_v21, %s1760_s2  ;;  %v984_v21 = vld [vmem:[%s3107_s3 + $0x38] sm:$0xff] }
 0x15a   :  { %1092 = vmatpush.msrb.mxu0 %v1019_v40  ;;  %v981_v40 = vld [vmem:[%s3107_s3 + $0x20] sm:$0xff] }
 0x15c   :  { %1093 = vmatpush.msrb.mxu0 %v1018_v35 }
 0x15e   :  { %1094 = vmatpush.msrb.mxu0 %v1017_v38  ;;  %v1009_v38 = vld [vmem:[%s3107_s3 + $0x100] sm:$0xff] }
 0x15f   :  { %937 = vperm.xlu1 %1720, %v923_v20  }
 0x160   :  { %1095 = vmatpush.msrb.mxu0 %v1016_v43  ;;  %v980_v43 = vld [vmem:[%s3107_s3 + $0x18] sm:$0xff] }
 0x161   :  { %927 = vperm.xlu2 %1719, %v921_v1  }
 0x162   :  { %1096 = vmatpush.msrb.mxu0 %v1015_v50 }
 0x164   :  { %1097 = vmatpush.msrb.mxu0 %v1014_v6 }
 0x167   :  { %1722 = vset.pattern.permute.xlu1 %v1758_v2 }
 0x168   :  { %962 = vperm.xlu1 %1722, %v922_v15   ;;  %v992_v15 = vld [vmem:[%s3107_s3 + $0x78] sm:$0xff] }
 0x169   :  { %942 = vperm.xlu2 %1719, %v924_v27   ;;  %1029 = vmatpush.msra.mxu3 %v992_v15 }
 0x170   :  { %970 = vperm.xlu1 %1722, %v924_v27  }
 0x171   :  { %1723 = vset.pattern.permute.xlu2 %v1758_v2  ;;  %v991_v2 = vld [vmem:[%s3107_s3 + $0x70] sm:$0xff] }
 0x172   :  { %966 = vperm.xlu2 %1723, %v923_v20   ;;  %1030 = vmatpush.msra.mxu3 %v991_v2 }
 0x174   :  { %1031 = vmatpush.msra.mxu3 %v990_v25 }
 0x176   :  { %1032 = vmatpush.msra.mxu3 %v989_v10 }
 0x178   :  { %1033 = vmatpush.msra.mxu3 %v988_v41 }
 0x17a   :  { %1034 = vmatpush.msra.mxu3 %v987_v44  ;;  %v979_v44 = vld [vmem:[%s3107_s3 + $0x10] sm:$0xff] }
 0x17c   :  { %1035 = vmatpush.msra.mxu3 %v986_v39 }
 0x17e   :  { %1036 = vmatpush.msra.mxu3 %v985_v12 }
 0x180   :  { %1037 = vmatpush.msra.mxu3 %v984_v21  ;;  %v1008_v21 = vld [vmem:[%s3107_s3 + $0xf8] sm:$0xff] }
 0x182   :  { %1038 = vmatpush.msra.mxu3 %v983_v5 }
 0x1a0   :  { %v718_v17 = vpop.permute.xlu1 %717 }
 0x1a1   :  { %v729_v46 = vrot.slane %v718_v17, 1  ;;  %v730_v58 = vrot.slane %v718_v17, 2  ;;  %v731_v62 = vrot.slane %v718_v17, 3  ;;  %v789_v13 = vmax.f32 %v2108_v16, %v718_v17  ;;  %v1012_v16 = vld [vmem:[%s3107_s3 + $0x118] sm:$0xff] }
 0x1a2   :  { %v732_v48 = vrot.slane %v718_v17, 4  ;;  %v733_v15 = vrot.slane %v718_v17, 5  ;;  %v734_v29 = vrot.slane %v718_v17, 6  ;;  %v735_v35 = vrot.slane %v718_v17, 7  ;;  %v978_v17 = vld [vmem:[%s3107_s3 + $0x8] sm:$0xff] }
 0x1a3   :  { %v790_v52 = vmax.f32 %v2106_v11, %v729_v46  ;;  %v791_v1 = vmax.f32 %v2110_v18, %v730_v58  ;;  %v1013_v11 = vld [vmem:[%s3107_s3 + $0x120] sm:$0xff]  ;;  %v792_v20 = vmax.f32 %v2114_v26, %v731_v62  ;;  %v982_v26 = vld [vmem:[%s3107_s3 + $0x28] sm:$0xff] }
 0x1a4   :  { %1098 = vmatpush.msrb.mxu0 %v1013_v11  ;;  %v793_v19 = vmax.f32 %v2127_v49, %v732_v48  ;;  %1039 = vmatpush.msra.mxu3 %v982_v26  ;;  %v794_v10 = vmax.f32 %v2132_v59, %v733_v15  ;;  %v795_v59 = vmax.f32 %v2134_v60, %v734_v29  ;;  %v977_v60 = vld [vmem:[%s3107_s3] sm:$0xff] }
 0x1a5   :  { %v853_v32 = vrot.slane %v790_v52, 7  ;;  %v855_v18 = vrot.slane %v791_v1, 6  ;;  %v857_v25 = vrot.slane %v792_v20, 5  ;;  %v2431_v39 = vmax.f32 %v2168_v3, %v735_v35 }
 0x1a6   :  { %1099 = vmatpush.msrb.mxu0 %v1012_v16  ;;  %1040 = vmatpush.msra.mxu3 %v981_v40  ;;  %v859_v41 = vrot.slane %v793_v19, 4  ;;  %v861_v46 = vrot.slane %v794_v10, 3  ;;  %v863_v12 = vrot.slane %v795_v59, 2  ;;  %v1006_v10 = vld [vmem:[%s3107_s3 + $0xe8] sm:$0xff]  ;;  %v1004_v59 = vld [vmem:[%s3107_s3 + $0xd8] sm:$0xff] }
 0x1a7   :  { %v854_v27 = vsel %vm678_vm4, %v853_v32, %v789_v13  ;;  %v865_v32 = vrot.slane %v2431_v39, 1 }
 0x1a8   :  { %v856_v2 = vsel %vm680_vm5, %v855_v18, %v854_v27  ;;  %1100 = vmatpush.msrb.mxu0 %v1011_v61  ;;  %1041 = vmatpush.msra.mxu3 %v980_v43 }
 0x1a9   :  { %v858_v49 = vsel %vm682_vm6, %v857_v25, %v856_v2 }
 0x1aa   :  { %1101 = vmatpush.msrb.mxu0 %v1010_v28  ;;  %v860_v50 = vsel %vm684_vm7, %v859_v41, %v858_v49  ;;  %1042 = vmatpush.msra.mxu3 %v979_v44  ;;  %v1005_v49 = vld [vmem:[%s3107_s3 + $0xe0] sm:$0xff] }
 0x1ab   :  { %v862_v62 = vsel %vm686_vm8, %v861_v46, %v860_v50 }
 0x1ac   :  { %1102 = vmatpush.msrb.mxu0 %v1009_v38  ;;  %1043 = vmatpush.msra.mxu3 %v978_v17  ;;  %v864_v18 = vsel %vm688_vm9, %v863_v12, %v862_v62 }
 0x1ae   :  { %1044 = vmatpush.msra.mxu3 %v977_v60  ;;  %v1002_v60 = vld [vmem:[%s3107_s3 + $0xc8] sm:$0xff] }
 0x1b0   :  { %1058 = vmatpush.msrb.mxu3 %v1008_v21 }
 0x1b3   :  { %v724_v58 = vpop.permute.xlu2 %723 }
 0x1b4   :  { %v750_v52 = vrot.slane %v724_v58, 1  ;;  %v751_v1 = vrot.slane %v724_v58, 2  ;;  %v752_v6 = vrot.slane %v724_v58, 3  ;;  %v753_v13 = vrot.slane %v724_v58, 4 }
 0x1b5   :  { %v813_v3 = vmax.f32 %v2243_v34, %v724_v58  ;;  %v754_v16 = vrot.slane %v724_v58, 5  ;;  %v755_v5 = vrot.slane %v724_v58, 6  ;;  %v756_v61 = vrot.slane %v724_v58, 7 }
 0x1b6   :  { %v814_v11 = vmax.f32 %v2248_v14, %v750_v52  ;;  %v815_v48 = vmax.f32 %v2271_v37, %v751_v1  ;;  %v816_v27 = vmax.f32 %v2277_v33, %v752_v6  ;;  %v1007_v14 = vld [vmem:[%s3107_s3 + $0xf0] sm:$0xff]  ;;  %v817_v28 = vmax.f32 %v2281_v0, %v753_v13 }
 0x1b7   :  { %v720_v20 = vpop.permute.xlu0 %719  ;;  %1059 = vmatpush.msrb.mxu3 %v1007_v14  ;;  %v818_v0 = vmax.f32 %v2288_v51, %v754_v16  ;;  %v819_v17 = vmax.f32 %v2299_v4, %v755_v5  ;;  %v2480_v4 = vsel %vm690_vm10, %v865_v32, %v864_v18 }
 0x1b8   :  { %v736_v26 = vrot.slane %v720_v20, 1  ;;  %v737_v15 = vrot.slane %v720_v20, 2  ;;  %v738_v34 = vrot.slane %v720_v20, 3  ;;  %v739_v19 = vrot.slane %v720_v20, 4 }
 0x1b9   :  { %v895_v37 = vrot.slane %v814_v11, 7  ;;  %v897_v2 = vrot.slane %v815_v48, 6  ;;  %v740_v25 = vrot.slane %v720_v20, 5  ;;  %v741_v35 = vrot.slane %v720_v20, 6  ;;  %1060 = vmatpush.msrb.mxu3 %v1006_v10 }
 0x1ba   :  { %v798_v33 = vmax.f32 %v2149_v31, %v736_v26  ;;  %v799_v29 = vmax.f32 %v2154_v36, %v737_v15  ;;  %v800_v40 = vmax.f32 %v2172_v8, %v738_v34  ;;  %v742_v38 = vrot.slane %v720_v20, 7  ;;  %v1000_v15 = vld [vmem:[%s3107_s3 + $0xb8] sm:$0xff] }
 0x1bb   :  { %v801_v41 = vmax.f32 %v2194_v53, %v739_v19  ;;  %v896_v31 = vsel %vm678_vm4, %v895_v37, %v813_v3  ;;  %v797_v36 = vmax.f32 %v2145_v22, %v720_v20  ;;  %v802_v44 = vmax.f32 %v2209_v7, %v740_v25  ;;  %1061 = vmatpush.msrb.mxu3 %v1005_v49  ;;  %v1003_v7 = vld [vmem:[%s3107_s3 + $0xd0] sm:$0xff]  ;;  %v928_v25 = vpop.permute.xlu2 %927 }
 0x1bc   :  { %v867_v8 = vrot.slane %v798_v33, 7  ;;  %v869_v43 = vrot.slane %v799_v29, 6  ;;  %v803_v50 = vmax.f32 %v2228_v47, %v741_v35  ;;  %v820_v53 = vmax.f32 %v2312_v55, %v756_v61  ;;  %v998_v35 = vld [vmem:[%s3107_s3 + $0xa8] sm:$0xff] }
 0x1bd   :  { %v898_v51 = vsel %vm680_vm5, %v897_v2, %v896_v31  ;;  %v804_v39 = vmax.f32 %v2236_v57, %v742_v38  ;;  %v871_v46 = vrot.slane %v800_v40, 5  ;;  %v899_v58 = vrot.slane %v816_v27, 5  ;;  %1062 = vmatpush.msrb.mxu3 %v1004_v59  ;;  %v1001_v27 = vld [vmem:[%s3107_s3 + $0xc0] sm:$0xff]  ;;  %v999_v2 = vld [vmem:[%s3107_s3 + $0xb0] sm:$0xff] }
 0x1be   :  { %v868_v22 = vsel %vm678_vm4, %v867_v8, %v797_v36  ;;  %v873_v47 = vrot.slane %v801_v41, 4  ;;  %v901_v55 = vrot.slane %v817_v28, 4  ;;  %v875_v1 = vrot.slane %v802_v44, 3  ;;  %v997_v8 = vld [vmem:[%s3107_s3 + $0xa0] sm:$0xff] }
 0x1bf   :  { %v870_v62 = vsel %vm680_vm5, %v869_v43, %v868_v22  ;;  %v2477_v52 = vpop.permute.xlu0 %932  ;;  %v900_v6 = vsel %vm682_vm6, %v899_v58, %v898_v51  ;;  %v903_v12 = vrot.slane %v818_v0, 3  ;;  %v877_v3 = vrot.slane %v803_v50, 2  ;;  %1063 = vmatpush.msrb.mxu3 %v1003_v7  ;;  %v996_v51 = vld [vmem:[%s3107_s3 + $0x98] sm:$0xff] }
 0x1c0   :  { %v872_v57 = vsel %vm682_vm6, %v871_v46, %v870_v62  ;;  %v902_v11 = vsel %vm684_vm7, %v901_v55, %v900_v6  ;;  %v905_v48 = vrot.slane %v819_v17, 2  ;;  %v879_v18 = vrot.slane %v804_v39, 1 }
 0x1c1   :  { %v874_v13 = vsel %vm684_vm7, %v873_v47, %v872_v57  ;;  %v904_v21 = vsel %vm686_vm8, %v903_v12, %v902_v11  ;;  %v907_v20 = vrot.slane %v820_v53, 1  ;;  %1064 = vmatpush.msrb.mxu3 %v1002_v60  ;;  %v913_v34 = vrot.slane %v2480_v4, 7 }
 0x1c2   :  { %v876_v32 = vsel %vm686_vm8, %v875_v1, %v874_v13  ;;  %v906_v5 = vsel %vm688_vm9, %v905_v48, %v904_v21  ;;  %v949_v37 = vrot.slane %v2480_v4, 1 }
 0x1c3   :  { %v878_v16 = vsel %vm688_vm9, %v877_v3, %v876_v32  ;;  %v2500_v26 = vsel %vm690_vm10, %v907_v20, %v906_v5  ;;  %1065 = vmatpush.msrb.mxu3 %v1001_v27  ;;  %v943_v11 = vpop.permute.xlu2 %942 }
 0x1c4   :  { %v2497_v61 = vsel %vm690_vm10, %v879_v18, %v878_v16  ;;  %v916_v19 = vrot.slane %v2500_v26, 7 }
 0x1c5   :  { %v950_v14 = vrot.slane %v2497_v61, 1  ;;  %1066 = vmatpush.msrb.mxu3 %v1000_v15  ;;  %v914_v10 = vrot.slane %v2497_v61, 7  ;;  %v952_v15 = vrot.slane %v2500_v26, 1 }
 0x1c6   :  { %v920_v28 = vsel %vm60_vm2, %v916_v19, %v913_v34 }
 0x1c7   :  { %v955_v33 = vsel %vm133_vm1, %v949_v37, %v950_v14  ;;  %v945_v29 = vmul.f32 %v928_v25, %v920_v28  ;;  %1067 = vmatpush.msrb.mxu3 %v999_v2  ;;  %v919_v39 = vsel %vm60_vm2, %v913_v34, %v914_v10 }
 0x1c8   :  { %v959_v40 = vpop.permute.xlu0 %958  ;;  %v946_v62 = vmul.f32 %v2477_v52, %v919_v39 }
 0x1c9   :  { %v722_v49 = vpop.permute.xlu1 %721  ;;  %v973_v38 = vmul.f32 %v959_v40, %v955_v33  ;;  %1045 = vmatmul.f32.vlgmr.msra.gmra.mxu3 %v945_v29  ;;  %v956_v29 = vsel %vm133_vm1, %v952_v15, %v949_v37 }
 0x1ca   :  { %v743_v41 = vrot.slane %v722_v49, 1  ;;  %v744_v0 = vrot.slane %v722_v49, 2  ;;  %v745_v31 = vrot.slane %v722_v49, 3  ;;  %v746_v36 = vrot.slane %v722_v49, 4  ;;  %1068 = vmatpush.msrb.mxu3 %v998_v35 }
 0x1cb   :  { %1103 = vmatmul.f32.vlgmr.msrb.gmra.mxu0 %v973_v38  ;;  %v747_v43 = vrot.slane %v722_v49, 5  ;;  %v748_v44 = vrot.slane %v722_v49, 6  ;;  %v749_v53 = vrot.slane %v722_v49, 7  ;;  %v805_v46 = vmax.f32 %v2192_v30, %v722_v49  ;;  %v994_v30 = vld [vmem:[%s3107_s3 + $0x88] sm:$0xff]  ;;  %v1730_v38 = vld [vmem:[%s3108_s4] ss:$0 sm:$0xff] }
 0x1cc   :  { %v806_v59 = vmax.f32 %v2196_v54, %v743_v41  ;;  %v807_v50 = vmax.f32 %v2220_v24, %v744_v0  ;;  %v808_v17 = vmax.f32 %v2234_v9, %v745_v31  ;;  %v809_v22 = vmax.f32 %v2252_v56, %v746_v36  ;;  %1069 = vmatpush.msrb.mxu3 %v997_v8  ;;  %v995_v24 = vld [vmem:[%s3107_s3 + $0x90] sm:$0xff]  ;;  %v967_v2 = vpop.permute.xlu2 %966 }
 0x1cd   :  { %v810_v54 = vmax.f32 %v2275_v23, %v747_v43  ;;  %v811_v9 = vmax.f32 %v2283_v42, %v748_v44  ;;  %v812_v47 = vmax.f32 %v2303_v45, %v749_v53  ;;  %v993_v45 = vld [vmem:[%s3107_s3 + $0x80] sm:$0xff] }
 0x1ce   :  { %v881_v58 = vrot.slane %v806_v59, 7  ;;  %v883_v7 = vrot.slane %v807_v50, 6  ;;  %1070 = vmatpush.msrb.mxu3 %v996_v51  ;;  %v885_v55 = vrot.slane %v808_v17, 5  ;;  %v887_v57 = vrot.slane %v809_v22, 4 }
 0x1cf   :  { %v889_v42 = vrot.slane %v810_v54, 3  ;;  %v891_v12 = vrot.slane %v811_v9, 2  ;;  %v893_v13 = vrot.slane %v812_v47, 1 }
 0x1d0   :  { %v882_v56 = vsel %vm678_vm4, %v881_v58, %v805_v46  ;;  %1071 = vmatpush.msrb.mxu3 %v995_v24 }
 0x1d1   :  { %v884_v23 = vsel %vm680_vm5, %v883_v7, %v882_v56  ;;  %v938_v1 = vpop.permute.xlu1 %937  ;;  %1048 = vmatmul.f32.gmra.mxu3 %v946_v62 }
 0x1d2   :  { %v886_v6 = vsel %vm682_vm6, %v885_v55, %v884_v23  ;;  %1072 = vmatpush.msrb.mxu3 %v994_v30 }
 0x1d3   :  { %v888_v52 = vsel %vm684_vm7, %v887_v57, %v886_v6 }
 0x1d4   :  { %v890_v60 = vsel %vm686_vm8, %v889_v42, %v888_v52  ;;  %1073 = vmatpush.msrb.mxu3 %v993_v45 }
 0x1d5   :  { %v892_v3 = vsel %vm688_vm9, %v891_v12, %v890_v60 }
 0x1d6   :  { %v894_v48 = vsel %vm690_vm10, %v893_v13, %v892_v3 }
 0x1d7   :  { %v915_v32 = vrot.slane %v894_v48, 7  ;;  %v951_v18 = vrot.slane %v894_v48, 1 }
 0x1d9   :  { %v918_v21 = vsel %vm60_vm2, %v914_v10, %v915_v32  ;;  %v954_v20 = vsel %vm133_vm1, %v950_v14, %v951_v18  ;;  %v917_v34 = vsel %vm60_vm2, %v915_v32, %v916_v19  ;;  %v953_v25 = vsel %vm133_vm1, %v951_v18, %v952_v15 }
 0x1da   :  { %v947_v27 = vmul.f32 %v938_v1, %v918_v21  ;;  %v963_v16 = vpop.permute.xlu1 %962  ;;  %v948_v28 = vmul.f32 %v943_v11, %v917_v34  ;;  %v975_v33 = vmul.f32 %v967_v2, %v953_v25 }
 0x1db   :  { %v974_v5 = vmul.f32 %v963_v16, %v954_v20 }
 0x1dc   :  { %1051 = vmatmul.f32.gmra.mxu3 %v947_v27 }
 0x1dd   :  { %1106 = vmatmul.f32.gmra.mxu0 %v974_v5 }
 0x1e2   :  { %v971_v14 = vpop.permute.xlu1 %970 }
 0x1e3   :  { %v976_v40 = vmul.f32 %v971_v14, %v956_v29 }
 0x1e4   :  { %1054 = vmatmul.f32.gmra.mxu3 %v948_v28 }
 0x1e5   :  { %1109 = vmatmul.f32.gmra.mxu0 %v975_v33 }
 0x1ec   :  { %1074 = vmatmul.f32.vlgmr.msrb.gmra.mxu3 %v2480_v4 }
 0x1ed   :  { %1112 = vmatmul.f32.gmra.mxu0 %v976_v40  ;;  %v1415_v40 = vld [vmem:[%s3109_s5 + $0xf8] sm:$0xff] }
 0x1ee   :  { %1536 = vmatpush.msrb.mxu2 %v1415_v40 }
 0x1f4   :  { %1077 = vmatmul.f32.gmra.mxu3 %v2497_v61 }
 0x1fc   :  { %1080 = vmatmul.f32.gmra.mxu3 %v894_v48 }
 0x204   :  { %1083 = vmatmul.f32.gmra.mxu3 %v2500_v26 }
 0x248   :  { %v1104_v63 = vpop.f32.mrf.mxu0 }
 0x24c   :  { %v1046_v19 = vpop.f32.mrf.mxu3 }
 0x24d   :  { %v1047_v37 = vadd.f32 %v1730_v38, %v1046_v19  ;;  %v1399_v19 = vld [vmem:[%s3109_s5 + $0x78] sm:$0xff] }
 0x24e   :  { %1516 = vmatpush.msrb.mxu1 %v1399_v19  ;;  %v1409_v19 = vld [vmem:[%s3109_s5 + $0xc8] sm:$0xff] }
 0x254   :  { %v1049_v35 = vpop.f32.mrf.mxu3 }
 0x255   :  { %v1050_v61 = vadd.f32 %v1730_v38, %v1049_v35  ;;  %v1414_v35 = vld [vmem:[%s3109_s5 + $0xf0] sm:$0xff] }
 0x256   :  { %1537 = vmatpush.msrb.mxu2 %v1414_v35 }
 0x25a   :  { %v1107_v36 = vpop.f32.mrf.mxu0 }
 0x25f   :  { %v1052_v10 = vpop.f32.mrf.mxu3 }
 0x260   :  { %v1053_v18 = vadd.f32 %v1730_v38, %v1052_v10 }
 0x262   :  { %v1110_v52 = vpop.f32.mrf.mxu0 }
 0x267   :  { %v2579_v49 = vpop.f32.mrf.mxu3 }
 0x268   :  { %v1056_v10 = vadd.f32 %v1730_v38, %v2579_v49  ;;  %v1413_v49 = vld [vmem:[%s3109_s5 + $0xe8] sm:$0xff]  ;;  %v1447_v38 = vld [vmem:[%s3109_s5 + $0x1f8] sm:$0xff] }
 0x269   :  { %1576 = vmatpush.msra.mxu0 %v1447_v38  ;;  %1538 = vmatpush.msrb.mxu2 %v1413_v49 }
 0x26f   :  { %v1075_v41 = vpop.f32.mrf.mxu3 }
 0x270   :  { %v1076_v0 = vadd.f32 %v1075_v41, %v1047_v37  ;;  %v1398_v41 = vld [vmem:[%s3109_s5 + $0x70] sm:$0xff] }
 0x271   :  { %1517 = vmatpush.msrb.mxu1 %v1398_v41 }
 0x272   :  { %v1105_v4 = vadd.f32 %v1104_v63, %v1076_v0  ;;  %v1431_v0 = vld [vmem:[%s3109_s5 + $0x178] sm:$0xff] }
 0x273   :  { %1556 = vmatpush.msra.mxu3 %v1431_v0  ;;  %v1442_v0 = vld [vmem:[%s3109_s5 + $0x1d0] sm:$0xff] }
 0x274   :  { %v1116_v31 = vmax.f32 %v1105_v4, 0.0 }
 0x276   :  { %v1124_v8 = vrot.slane %v1116_v31, 2  ;;  %v1125_v43 = vrot.slane %v1116_v31, 4  ;;  %v1126_v26 = vrot.slane %v1116_v31, 6  ;;  %v1148_v44 = vsel %vm421_vm3, %v1116_v31, -inf }
 0x277   :  { %v1149_v59 = vrot.slane %v1148_v44, 4  ;;  %v1078_v50 = vpop.f32.mrf.mxu3 }
 0x278   :  { %v1155_v17 = vsel %vm421_vm3, %v1124_v8, -inf  ;;  %v1162_v53 = vsel %vm421_vm3, %v1125_v43, -inf  ;;  %v1169_v51 = vsel %vm421_vm3, %v1126_v26, -inf  ;;  %v1079_v39 = vadd.f32 %v1078_v50, %v1050_v61  ;;  %v1397_v8 = vld [vmem:[%s3109_s5 + $0x68] sm:$0xff]  ;;  %v1430_v50 = vld [vmem:[%s3109_s5 + $0x170] sm:$0xff] }
 0x279   :  { %v1150_v22 = vmax.f32 %v1148_v44, %v1149_v59  ;;  %v1156_v46 = vrot.slane %v1155_v17, 4  ;;  %v1163_v58 = vrot.slane %v1162_v53, 4  ;;  %v1170_v7 = vrot.slane %v1169_v51, 4  ;;  %1557 = vmatpush.msra.mxu3 %v1430_v50  ;;  %1518 = vmatpush.msrb.mxu1 %v1397_v8  ;;  %v1392_v8 = vld [vmem:[%s3109_s5 + $0x40] sm:$0xff] }
 0x27a   :  { %v1108_v54 = vadd.f32 %v1107_v36, %v1079_v39 }
 0x27b   :  { %v1151_v24 = vrot.slane %v1150_v22, 2  ;;  %v1157_v9 = vmax.f32 %v1155_v17, %v1156_v46  ;;  %v1164_v62 = vmax.f32 %v1162_v53, %v1163_v58  ;;  %v1171_v47 = vmax.f32 %v1169_v51, %v1170_v7  ;;  %v1446_v17 = vld [vmem:[%s3109_s5 + $0x1f0] sm:$0xff]  ;;  %v1412_v46 = vld [vmem:[%s3109_s5 + $0xe0] sm:$0xff]  ;;  %v1429_v7 = vld [vmem:[%s3109_s5 + $0x168] sm:$0xff] }
 0x27c   :  { %v1117_v56 = vmax.f32 %v1108_v54, 0.0  ;;  %v1396_v58 = vld [vmem:[%s3109_s5 + $0x60] sm:$0xff]  ;;  %v1113_v54 = vpop.f32.mrf.mxu0  ;;  %1577 = vmatpush.msra.mxu0 %v1446_v17  ;;  %1558 = vmatpush.msra.mxu3 %v1429_v7 }
 0x27d   :  { %v1152_v55 = vmax.f32 %v1150_v22, %v1151_v24  ;;  %v1158_v30 = vrot.slane %v1157_v9, 2  ;;  %v1165_v23 = vrot.slane %v1164_v62, 2  ;;  %v1172_v57 = vrot.slane %v1171_v47, 2  ;;  %1539 = vmatpush.msrb.mxu2 %v1412_v46  ;;  %1519 = vmatpush.msrb.mxu1 %v1396_v58 }
 0x27e   :  { %v1127_v1 = vrot.slane %v1117_v56, 2  ;;  %v1128_v6 = vrot.slane %v1117_v56, 4  ;;  %v1129_v42 = vrot.slane %v1117_v56, 6  ;;  %v1176_v45 = vsel %vm421_vm3, %v1117_v56, -inf  ;;  %v1445_v56 = vld [vmem:[%s3109_s5 + $0x1e8] sm:$0xff] }
 0x27f   :  { %v1159_v12 = vmax.f32 %v1157_v9, %v1158_v30  ;;  %v1166_v60 = vmax.f32 %v1164_v62, %v1165_v23  ;;  %v1081_v13 = vpop.f32.mrf.mxu3  ;;  %v1177_v3 = vrot.slane %v1176_v45, 4  ;;  %v1153_v21 = vrot.slane %v1152_v55, 1  ;;  %1578 = vmatpush.msra.mxu0 %v1445_v56 }
 0x280   :  { %v1183_v11 = vsel %vm421_vm3, %v1127_v1, -inf  ;;  %v1190_v48 = vsel %vm421_vm3, %v1128_v6, -inf  ;;  %v1197_v32 = vsel %vm421_vm3, %v1129_v42, -inf  ;;  %v1173_v27 = vmax.f32 %v1171_v47, %v1172_v57  ;;  %v1395_v6 = vld [vmem:[%s3109_s5 + $0x58] sm:$0xff] }
 0x281   :  { %v1160_v20 = vrot.slane %v1159_v12, 1  ;;  %v1178_v16 = vmax.f32 %v1176_v45, %v1177_v3  ;;  %v1184_v5 = vrot.slane %v1183_v11, 4  ;;  %v1191_v15 = vrot.slane %v1190_v48, 4  ;;  %v1411_v42 = vld [vmem:[%s3109_s5 + $0xd8] sm:$0xff]  ;;  %1520 = vmatpush.msrb.mxu1 %v1395_v6 }
 0x282   :  { %v1198_v34 = vrot.slane %v1197_v32, 4  ;;  %v1167_v25 = vrot.slane %v1166_v60, 1  ;;  %v1082_v28 = vadd.f32 %v1081_v13, %v1053_v18  ;;  %v2606_v63 = vmax.f32 %v1152_v55, %v1153_v21  ;;  %v1428_v55 = vld [vmem:[%s3109_s5 + $0x160] sm:$0xff]  ;;  %v1427_v3 = vld [vmem:[%s3109_s5 + $0x158] sm:$0xff]  ;;  %v1394_v21 = vld [vmem:[%s3109_s5 + $0x50] sm:$0xff]  ;;  %1540 = vmatpush.msrb.mxu2 %v1411_v42 }
 0x283   :  { %v2592_v2 = vmax.f32 %v1159_v12, %v1160_v20  ;;  %v1179_v33 = vrot.slane %v1178_v16, 2  ;;  %v1185_v14 = vmax.f32 %v1183_v11, %v1184_v5  ;;  %v2594_v29 = vmax.f32 %v1190_v48, %v1191_v15  ;;  %v1444_v13 = vld [vmem:[%s3109_s5 + $0x1e0] sm:$0xff]  ;;  %1559 = vmatpush.msra.mxu3 %v1428_v55  ;;  %v1410_v20 = vld [vmem:[%s3109_s5 + $0xd0] sm:$0xff]  ;;  %1521 = vmatpush.msrb.mxu1 %v1394_v21 }
 0x284   :  { %v1111_v37 = vadd.f32 %v1110_v52, %v1082_v28  ;;  %v1174_v4 = vrot.slane %v1173_v27, 1  ;;  %v2614_v61 = vmax.f32 %v1197_v32, %v1198_v34  ;;  %v2625_v43 = vmax.f32 %v1166_v60, %v1167_v25  ;;  %v1443_v34 = vld [vmem:[%s3109_s5 + $0x1d8] sm:$0xff]  ;;  %v1426_v25 = vld [vmem:[%s3109_s5 + $0x150] sm:$0xff]  ;;  %1579 = vmatpush.msra.mxu0 %v1444_v13  ;;  %1541 = vmatpush.msrb.mxu2 %v1410_v20  ;;  %v1440_v55 = vld [vmem:[%s3109_s5 + $0x1c0] sm:$0xff] }
 0x285   :  { %v1180_v31 = vmax.f32 %v1178_v16, %v1179_v33  ;;  %v1186_v36 = vrot.slane %v1185_v14, 2  ;;  %v1276_v59 = vsel %vm678_vm4, %v2592_v2, %v2606_v63  ;;  %v1193_v22 = vrot.slane %v2594_v29, 2  ;;  %1560 = vmatpush.msra.mxu3 %v1427_v3  ;;  %v1389_v20 = vld [vmem:[%s3109_s5 + $0x28] sm:$0xff] }
 0x286   :  { %v1118_v26 = vmax.f32 %v1111_v37, 0.0  ;;  %v2655_v30 = vmax.f32 %v1173_v27, %v1174_v4  ;;  %v1200_v1 = vrot.slane %v2614_v61, 2  ;;  %v2669_v60 = vsel %vm680_vm5, %v2625_v43, %v1276_v59  ;;  %v1425_v4 = vld [vmem:[%s3109_s5 + $0x148] sm:$0xff]  ;;  %1580 = vmatpush.msra.mxu0 %v1443_v34  ;;  %1542 = vmatpush.msrb.mxu2 %v1409_v19 }
 0x287   :  { %v1084_v44 = vpop.f32.mrf.mxu3  ;;  %v1181_v53 = vrot.slane %v1180_v31, 1  ;;  %v2636_v39 = vmax.f32 %v1185_v14, %v1186_v36  ;;  %v2687_v15 = vmax.f32 %v2594_v29, %v1193_v22  ;;  %v1393_v29 = vld [vmem:[%s3109_s5 + $0x48] sm:$0xff]  ;;  %1561 = vmatpush.msra.mxu3 %v1426_v25 }
 0x288   :  { %v1085_v51 = vadd.f32 %v1084_v44, %v1056_v10  ;;  %v1130_v24 = vrot.slane %v1118_v26, 2  ;;  %v1131_v9 = vrot.slane %v1118_v26, 4  ;;  %v1132_v62 = vrot.slane %v1118_v26, 6  ;;  %1522 = vmatpush.msrb.mxu1 %v1393_v29  ;;  %1581 = vmatpush.msra.mxu0 %v1442_v0  ;;  %v1437_v0 = vld [vmem:[%s3109_s5 + $0x1a8] sm:$0xff] }
 0x289   :  { %v1204_v47 = vsel %vm421_vm3, %v1118_v26, -inf  ;;  %v2683_v27 = vmax.f32 %v1180_v31, %v1181_v53  ;;  %v1188_v5 = vrot.slane %v2636_v39, 1  ;;  %v1408_v26 = vld [vmem:[%s3109_s5 + $0xc0] sm:$0xff]  ;;  %v1441_v53 = vld [vmem:[%s3109_s5 + $0x1c8] sm:$0xff]  ;;  %1562 = vmatpush.msra.mxu3 %v1425_v4  ;;  %v1195_v6 = vrot.slane %v2687_v15, 1 }
 0x28a   :  { %v1205_v23 = vrot.slane %v1204_v47, 4  ;;  %v1114_v57 = vadd.f32 %v1113_v54, %v1085_v51  ;;  %v1211_v45 = vsel %vm421_vm3, %v1130_v24, -inf  ;;  %v1218_v52 = vsel %vm421_vm3, %v1131_v9, -inf  ;;  %v1424_v51 = vld [vmem:[%s3109_s5 + $0x140] sm:$0xff]  ;;  %v1391_v54 = vld [vmem:[%s3109_s5 + $0x38] sm:$0xff]  ;;  %1523 = vmatpush.msrb.mxu1 %v1392_v8  ;;  %1543 = vmatpush.msrb.mxu2 %v1408_v26 }
 0x28b   :  { %v1225_v12 = vsel %vm421_vm3, %v1132_v62, -inf  ;;  %v1212_v48 = vrot.slane %v1211_v45, 4  ;;  %v1219_v32 = vrot.slane %v1218_v52, 4  ;;  %v1407_v24 = vld [vmem:[%s3109_s5 + $0xb8] sm:$0xff]  ;;  %v2736_v42 = vmax.f32 %v2614_v61, %v1200_v1  ;;  %1582 = vmatpush.msra.mxu0 %v1441_v53  ;;  %1563 = vmatpush.msra.mxu3 %v1424_v51  ;;  %v1406_v1 = vld [vmem:[%s3109_s5 + $0xb0] sm:$0xff]  ;;  %v1404_v4 = vld [vmem:[%s3109_s5 + $0xa0] sm:$0xff] }
 0x28c   :  { %v1206_v11 = vmax.f32 %v1204_v47, %v1205_v23  ;;  %v1226_v18 = vrot.slane %v1225_v12, 4  ;;  %v1119_v16 = vmax.f32 %v1114_v57, 0.0  ;;  %1524 = vmatpush.msrb.mxu1 %v1391_v54  ;;  %1544 = vmatpush.msrb.mxu2 %v1407_v24  ;;  %v1439_v61 = vld [vmem:[%s3109_s5 + $0x1b8] sm:$0xff]  ;;  %v2774_v29 = vmax.f32 %v2687_v15, %v1195_v6  ;;  %v1421_v15 = vld [vmem:[%s3109_s5 + $0x128] sm:$0xff]  ;;  %v1420_v26 = vld [vmem:[%s3109_s5 + $0x120] sm:$0xff] }
 0x28d   :  { %v1213_v33 = vmax.f32 %v1211_v45, %v1212_v48  ;;  %v1220_v14 = vmax.f32 %v1218_v52, %v1219_v32  ;;  %v1390_v45 = vld [vmem:[%s3109_s5 + $0x30] sm:$0xff]  ;;  %v1423_v52 = vld [vmem:[%s3109_s5 + $0x138] sm:$0xff]  ;;  %1583 = vmatpush.msra.mxu0 %v1440_v55  ;;  %v1436_v53 = vld [vmem:[%s3109_s5 + $0x1a0] sm:$0xff] }
 0x28e   :  { %v1207_v28 = vrot.slane %v1206_v11, 2  ;;  %v1227_v40 = vmax.f32 %v1225_v12, %v1226_v18  ;;  %v1133_v35 = vrot.slane %v1119_v16, 2  ;;  %v1134_v10 = vrot.slane %v1119_v16, 4  ;;  %1525 = vmatpush.msrb.mxu1 %v1390_v45  ;;  %1564 = vmatpush.msra.mxu3 %v1423_v52  ;;  %v1387_v8 = vld [vmem:[%s3109_s5 + $0x18] sm:$0xff]  ;;  %v1385_v55 = vld [vmem:[%s3109_s5 + $0x8] sm:$0xff]  ;;  %v1434_v52 = vld [vmem:[%s3109_s5 + $0x190] sm:$0xff] }
 0x28f   :  { %v1135_v37 = vrot.slane %v1119_v16, 6  ;;  %v1232_v41 = vsel %vm421_vm3, %v1119_v16, -inf  ;;  %v1214_v36 = vrot.slane %v1213_v33, 2  ;;  %v1221_v49 = vrot.slane %v1220_v14, 2  ;;  %v1422_v16 = vld [vmem:[%s3109_s5 + $0x130] sm:$0xff]  ;;  %1584 = vmatpush.msra.mxu0 %v1439_v61  ;;  %1545 = vmatpush.msrb.mxu2 %v1406_v1  ;;  %v1403_v51 = vld [vmem:[%s3109_s5 + $0x98] sm:$0xff] }
 0x290   :  { %v1208_v31 = vmax.f32 %v1206_v11, %v1207_v28  ;;  %v1228_v38 = vrot.slane %v1227_v40, 2  ;;  %v1233_v44 = vrot.slane %v1232_v41, 4  ;;  %v1239_v59 = vsel %vm421_vm3, %v1133_v35, -inf  ;;  %v1388_v35 = vld [vmem:[%s3109_s5 + $0x20] sm:$0xff]  ;;  %1526 = vmatpush.msrb.mxu1 %v1389_v20  ;;  %1565 = vmatpush.msra.mxu3 %v1422_v16  ;;  %v1463_v20 = vld [vmem:[%s3109_s5 + $0x278] sm:$0xff] }
 0x291   :  { %v1246_v50 = vsel %vm421_vm3, %v1134_v10, -inf  ;;  %v1253_v17 = vsel %vm421_vm3, %v1135_v37, -inf  ;;  %v1215_v46 = vmax.f32 %v1213_v33, %v1214_v36  ;;  %v1222_v58 = vmax.f32 %v1220_v14, %v1221_v49  ;;  %v1438_v14 = vld [vmem:[%s3109_s5 + $0x1b0] sm:$0xff]  ;;  %v1400_v16 = vld [vmem:[%s3109_s5 + $0x80] sm:$0xff] }
 0x292   :  { %v1209_v22 = vrot.slane %v1208_v31, 1  ;;  %v1229_v7 = vmax.f32 %v1227_v40, %v1228_v38  ;;  %v1234_v9 = vmax.f32 %v1232_v41, %v1233_v44  ;;  %v1240_v62 = vrot.slane %v1239_v59, 4  ;;  %v1405_v40 = vld [vmem:[%s3109_s5 + $0xa8] sm:$0xff]  ;;  %1585 = vmatpush.msra.mxu0 %v1438_v14  ;;  %1527 = vmatpush.msrb.mxu1 %v1388_v35  ;;  %v1479_v14 = vld [vmem:[%s3109_s5 + $0x2f8] sm:$0xff]  ;;  %v1494_v35 = vld [vmem:[%s3109_s5 + $0x370] sm:$0xff] }
 0x293   :  { %v1247_v47 = vrot.slane %v1246_v50, 4  ;;  %v1254_v56 = vrot.slane %v1253_v17, 4  ;;  %v1216_v23 = vrot.slane %v1215_v46, 1  ;;  %v1223_v57 = vrot.slane %v1222_v58, 1  ;;  %1546 = vmatpush.msrb.mxu2 %v1405_v40  ;;  %1566 = vmatpush.msra.mxu3 %v1421_v15  ;;  %v1495_v40 = vld [vmem:[%s3109_s5 + $0x378] sm:$0xff]  ;;  %v1510_v15 = vld [vmem:[%s3109_s5 + $0x3f0] sm:$0xff] }
 0x294   :  { %v2744_v12 = vmax.f32 %v1208_v31, %v1209_v22  ;;  %v1235_v13 = vrot.slane %v1234_v9, 2  ;;  %v1241_v3 = vmax.f32 %v1239_v59, %v1240_v62  ;;  %v1230_v18 = vrot.slane %v1229_v7, 1  ;;  %1586 = vmatpush.msra.mxu0 %v1437_v0  ;;  %1528 = vmatpush.msrb.mxu1 %v1387_v8  ;;  %v1435_v62 = vld [vmem:[%s3109_s5 + $0x198] sm:$0xff] }
 0x295   :  { %v1248_v11 = vmax.f32 %v1246_v50, %v1247_v47  ;;  %v2752_v48 = vmax.f32 %v1215_v46, %v1216_v23  ;;  %v2754_v32 = vmax.f32 %v1222_v58, %v1223_v57  ;;  %v1255_v21 = vmax.f32 %v1253_v17, %v1254_v56  ;;  %1547 = vmatpush.msrb.mxu2 %v1404_v4  ;;  %v1386_v58 = vld [vmem:[%s3109_s5 + $0x10] sm:$0xff]  ;;  %v1459_v0 = vld [vmem:[%s3109_s5 + $0x258] sm:$0xff]  ;;  %v1476_v4 = vld [vmem:[%s3109_s5 + $0x2e0] sm:$0xff] }
 0x296   :  { %v1236_v34 = vmax.f32 %v1234_v9, %v1235_v13  ;;  %v1242_v25 = vrot.slane %v1241_v3, 2  ;;  %v2765_v28 = vmax.f32 %v2636_v39, %v1188_v5  ;;  %v1278_v39 = vsel %vm682_vm6, %v2655_v30, %v2669_v60  ;;  %1567 = vmatpush.msra.mxu3 %v1420_v26  ;;  %v1402_v47 = vld [vmem:[%s3109_s5 + $0x90] sm:$0xff]  ;;  %1587 = vmatpush.msra.mxu0 %v1436_v53  ;;  %v1401_v13 = vld [vmem:[%s3109_s5 + $0x88] sm:$0xff]  ;;  %v1475_v8 = vld [vmem:[%s3109_s5 + $0x2d8] sm:$0xff] }
 0x297   :  { %v1249_v33 = vrot.slane %v1248_v11, 2  ;;  %v1256_v19 = vrot.slane %v1255_v21, 2  ;;  %v1283_v5 = vsel %vm678_vm4, %v2752_v48, %v2744_v12  ;;  %v1279_v60 = vsel %vm684_vm7, %v2683_v27, %v1278_v39  ;;  %1548 = vmatpush.msrb.mxu2 %v1403_v51  ;;  %v1418_v23 = vld [vmem:[%s3109_s5 + $0x110] sm:$0xff]  ;;  %1529 = vmatpush.msrb.mxu1 %v1386_v58  ;;  %v1461_v39 = vld [vmem:[%s3109_s5 + $0x268] sm:$0xff]  ;;  %v1491_v26 = vld [vmem:[%s3109_s5 + $0x358] sm:$0xff] }
 0x298   :  { %v1237_v10 = vrot.slane %v1236_v34, 1  ;;  %v1243_v37 = vmax.f32 %v1241_v3, %v1242_v25  ;;  %v2796_v31 = vmax.f32 %v1229_v7, %v1230_v18  ;;  %v1202_v36 = vrot.slane %v2736_v42, 1  ;;  %v1419_v7 = vld [vmem:[%s3109_s5 + $0x118] sm:$0xff]  ;;  %1588 = vmatpush.msra.mxu0 %v1435_v62  ;;  %v1433_v18 = vld [vmem:[%s3109_s5 + $0x188] sm:$0xff]  ;;  %v1432_v25 = vld [vmem:[%s3109_s5 + $0x180] sm:$0xff] }
 0x299   :  { %v1250_v41 = vmax.f32 %v1248_v11, %v1249_v33  ;;  %v1257_v49 = vmax.f32 %v1255_v21, %v1256_v19  ;;  %v1284_v38 = vsel %vm680_vm5, %v2754_v32, %v1283_v5  ;;  %v1280_v17 = vsel %vm686_vm8, %v2765_v28, %v1279_v60  ;;  %1568 = vmatpush.msra.mxu3 %v1419_v7  ;;  %v1417_v11 = vld [vmem:[%s3109_s5 + $0x108] sm:$0xff]  ;;  %v1462_v33 = vld [vmem:[%s3109_s5 + $0x270] sm:$0xff]  ;;  %v1511_v19 = vld [vmem:[%s3109_s5 + $0x3f8] sm:$0xff] }
 0x29a   :  { %v2807_v44 = vmax.f32 %v1236_v34, %v1237_v10  ;;  %v1244_v59 = vrot.slane %v1243_v37, 1  ;;  %v1285_v46 = vsel %vm682_vm6, %v2796_v31, %v1284_v38  ;;  %v1281_v56 = vsel %vm688_vm9, %v2774_v29, %v1280_v17  ;;  %1549 = vmatpush.msrb.mxu2 %v1402_v47  ;;  %1530 = vmatpush.msrb.mxu1 %v1385_v55  ;;  %v1416_v34 = vld [vmem:[%s3109_s5 + $0x100] sm:$0xff]  ;;  %v1478_v5 = vld [vmem:[%s3109_s5 + $0x2f0] sm:$0xff]  ;;  %v1509_v60 = vld [vmem:[%s3109_s5 + $0x3e8] sm:$0xff] }
 0x29b   :  { %v1251_v50 = vrot.slane %v1250_v41, 1  ;;  %v1258_v22 = vrot.slane %v1257_v49, 1  ;;  %v2846_v57 = vmax.f32 %v2736_v42, %v1202_v36  ;;  %v1384_v42 = vld [vmem:[%s3109_s5] sm:$0xff]  ;;  %1569 = vmatpush.msra.mxu3 %v1418_v23  ;;  %1589 = vmatpush.msra.mxu0 %v1434_v52  ;;  %v1458_v38 = vld [vmem:[%s3109_s5 + $0x250] sm:$0xff]  ;;  %v1489_v58 = vld [vmem:[%s3109_s5 + $0x348] sm:$0xff] }
 0x29c   :  { %v2825_v54 = vmax.f32 %v1243_v37, %v1244_v59  ;;  %v1286_v9 = vsel %vm684_vm7, %v2807_v44, %v1285_v46  ;;  %1550 = vmatpush.msrb.mxu2 %v1401_v13  ;;  %1531 = vmatpush.msrb.mxu1 %v1384_v42  ;;  %v1460_v10 = vld [vmem:[%s3109_s5 + $0x260] sm:$0xff]  ;;  %v1477_v37 = vld [vmem:[%s3109_s5 + $0x2e8] sm:$0xff]  ;;  %v1507_v59 = vld [vmem:[%s3109_s5 + $0x3d8] sm:$0xff] }
 0x29d   :  { %v2827_v24 = vmax.f32 %v1250_v41, %v1251_v50  ;;  %v2848_v6 = vmax.f32 %v1257_v49, %v1258_v22  ;;  %v1282_v61 = vsel %vm690_vm10, %v2846_v57, %v1281_v56  ;;  %1570 = vmatpush.msra.mxu3 %v1417_v11  ;;  %1590 = vmatpush.msra.mxu0 %v1433_v18  ;;  %v1493_v41 = vld [vmem:[%s3109_s5 + $0x368] sm:$0xff]  ;;  %v1492_v36 = vld [vmem:[%s3109_s5 + $0x360] sm:$0xff]  ;;  %v1474_v17 = vld [vmem:[%s3109_s5 + $0x2d0] sm:$0xff] }
 0x29e   :  { %v1287_v45 = vsel %vm686_vm8, %v2825_v54, %v1286_v9  ;;  %1596 = vmatpush.msra.mxu1 %v1463_v20  ;;  %1551 = vmatpush.msrb.mxu2 %v1400_v16  ;;  %v1508_v49 = vld [vmem:[%s3109_s5 + $0x3e0] sm:$0xff]  ;;  %v1457_v50 = vld [vmem:[%s3109_s5 + $0x248] sm:$0xff]  ;;  %v1490_v53 = vld [vmem:[%s3109_s5 + $0x350] sm:$0xff] }
 0x29f   :  { %v1288_v3 = vsel %vm688_vm9, %v2827_v24, %v1287_v45  ;;  %1571 = vmatpush.msra.mxu3 %v1416_v34  ;;  %1591 = vmatpush.msra.mxu0 %v1432_v25  ;;  %v1506_v51 = vld [vmem:[%s3109_s5 + $0x3d0] sm:$0xff]  ;;  %v1456_v22 = vld [vmem:[%s3109_s5 + $0x240] sm:$0xff]  ;;  %v1473_v46 = vld [vmem:[%s3109_s5 + $0x2c8] sm:$0xff] }
 0x2a0   :  { %v1289_v1 = vsel %vm690_vm10, %v2848_v6, %v1288_v3  ;;  %1597 = vmatpush.msra.mxu1 %v1462_v33  ;;  %1616 = vmatpush.msra.mxu2 %v1479_v14  ;;  %v1505_v7 = vld [vmem:[%s3109_s5 + $0x3c8] sm:$0xff]  ;;  %v1455_v9 = vld [vmem:[%s3109_s5 + $0x238] sm:$0xff]  ;;  %v1472_v62 = vld [vmem:[%s3109_s5 + $0x2c0] sm:$0xff] }
 0x2a1   :  { %v1724_v21 = vpack.i.bf16 %v1282_v61, %v1289_v1  ;;  %1636 = vmatpush.msrb.mxu3 %v1495_v40  ;;  %1656 = vmatpush.msrb.mxu0 %v1511_v19  ;;  %v1488_v47 = vld [vmem:[%s3109_s5 + $0x340] sm:$0xff]  ;;  %v1454_v55 = vld [vmem:[%s3109_s5 + $0x230] sm:$0xff]  ;;  %v1471_v23 = vld [vmem:[%s3109_s5 + $0x2b8] sm:$0xff] }
 0x2a2   :  { %1598 = vmatpush.msra.mxu1 %v1461_v39  ;;  %1617 = vmatpush.msra.mxu2 %v1478_v5  ;;  %v1504_v56 = vld [vmem:[%s3109_s5 + $0x3c0] sm:$0xff]  ;;  %v1487_v45 = vld [vmem:[%s3109_s5 + $0x338] sm:$0xff]  ;;  %v1453_v13 = vld [vmem:[%s3109_s5 + $0x228] sm:$0xff] }
 0x2a3   :  { %1725 = vrot.lane.b32.xlu2 %v1724_v21, %s1761_s24  ;;  %1637 = vmatpush.msrb.mxu3 %v1494_v35  ;;  %v1503_v52 = vld [vmem:[%s3109_s5 + $0x3b8] sm:$0xff]  ;;  %v1470_v3 = vld [vmem:[%s3109_s5 + $0x2b0] sm:$0xff]  ;;  %v1452_v61 = vld [vmem:[%s3109_s5 + $0x220] sm:$0xff] }
 0x2a4   :  { %1657 = vmatpush.msrb.mxu0 %v1510_v15  ;;  %1599 = vmatpush.msra.mxu1 %v1460_v10  ;;  %v1486_v42 = vld [vmem:[%s3109_s5 + $0x330] sm:$0xff]  ;;  %v1469_v1 = vld [vmem:[%s3109_s5 + $0x2a8] sm:$0xff]  ;;  %v1451_v20 = vld [vmem:[%s3109_s5 + $0x218] sm:$0xff] }
 0x2a5   :  { %1618 = vmatpush.msra.mxu2 %v1477_v37  ;;  %1638 = vmatpush.msrb.mxu3 %v1493_v41  ;;  %v1502_v11 = vld [vmem:[%s3109_s5 + $0x3b0] sm:$0xff]  ;;  %v1485_v18 = vld [vmem:[%s3109_s5 + $0x328] sm:$0xff]  ;;  %v1468_v16 = vld [vmem:[%s3109_s5 + $0x2a0] sm:$0xff] }
 0x2a6   :  { %1658 = vmatpush.msrb.mxu0 %v1509_v60  ;;  %1600 = vmatpush.msra.mxu1 %v1459_v0  ;;  %v1501_v21 = vld [vmem:[%s3109_s5 + $0x3a8] sm:$0xff]  ;;  %v1484_v34 = vld [vmem:[%s3109_s5 + $0x320] sm:$0xff]  ;;  %v1450_v33 = vld [vmem:[%s3109_s5 + $0x210] sm:$0xff] }
 0x2a7   :  { %1619 = vmatpush.msra.mxu2 %v1476_v4  ;;  %1639 = vmatpush.msrb.mxu3 %v1492_v36  ;;  %v1500_v25 = vld [vmem:[%s3109_s5 + $0x3a0] sm:$0xff]  ;;  %v1467_v14 = vld [vmem:[%s3109_s5 + $0x298] sm:$0xff]  ;;  %v1449_v39 = vld [vmem:[%s3109_s5 + $0x208] sm:$0xff] }
 0x2a8   :  { %1659 = vmatpush.msrb.mxu0 %v1508_v49  ;;  %1601 = vmatpush.msra.mxu1 %v1458_v38  ;;  %v1483_v40 = vld [vmem:[%s3109_s5 + $0x318] sm:$0xff]  ;;  %v1466_v5 = vld [vmem:[%s3109_s5 + $0x290] sm:$0xff]  ;;  %v1448_v10 = vld [vmem:[%s3109_s5 + $0x200] sm:$0xff] }
 0x2a9   :  { %1620 = vmatpush.msra.mxu2 %v1475_v8  ;;  %1640 = vmatpush.msrb.mxu3 %v1491_v26  ;;  %v1499_v19 = vld [vmem:[%s3109_s5 + $0x398] sm:$0xff]  ;;  %v1482_v35 = vld [vmem:[%s3109_s5 + $0x310] sm:$0xff]  ;;  %v1465_v37 = vld [vmem:[%s3109_s5 + $0x288] sm:$0xff] }
 0x2aa   :  { %1660 = vmatpush.msrb.mxu0 %v1507_v59  ;;  %1602 = vmatpush.msra.mxu1 %v1457_v50  ;;  %v1498_v15 = vld [vmem:[%s3109_s5 + $0x390] sm:$0xff]  ;;  %v1481_v41 = vld [vmem:[%s3109_s5 + $0x308] sm:$0xff]  ;;  %v1464_v0 = vld [vmem:[%s3109_s5 + $0x280] sm:$0xff] }
 0x2ab   :  { %1621 = vmatpush.msra.mxu2 %v1474_v17  ;;  %1641 = vmatpush.msrb.mxu3 %v1490_v53  ;;  %v1497_v60 = vld [vmem:[%s3109_s5 + $0x388] sm:$0xff]  ;;  %v1480_v4 = vld [vmem:[%s3109_s5 + $0x300] sm:$0xff] }
 0x2ac   :  { %1661 = vmatpush.msrb.mxu0 %v1506_v51  ;;  %1603 = vmatpush.msra.mxu1 %v1456_v22  ;;  %v1496_v36 = vld [vmem:[%s3109_s5 + $0x380] sm:$0xff] }
 0x2ad   :  { %1622 = vmatpush.msra.mxu2 %v1473_v46  ;;  %1642 = vmatpush.msrb.mxu3 %v1489_v58 }
 0x2ae   :  { %1662 = vmatpush.msrb.mxu0 %v1505_v7  ;;  %1604 = vmatpush.msra.mxu1 %v1455_v9 }
 0x2af   :  { %1623 = vmatpush.msra.mxu2 %v1472_v62  ;;  %1643 = vmatpush.msrb.mxu3 %v1488_v47 }
 0x2b0   :  { %1663 = vmatpush.msrb.mxu0 %v1504_v56  ;;  %1605 = vmatpush.msra.mxu1 %v1454_v55 }
 0x2b1   :  { %1624 = vmatpush.msra.mxu2 %v1471_v23  ;;  %1644 = vmatpush.msrb.mxu3 %v1487_v45 }
 0x2b2   :  { %1664 = vmatpush.msrb.mxu0 %v1503_v52  ;;  %1606 = vmatpush.msra.mxu1 %v1453_v13 }
 0x2b3   :  { %1625 = vmatpush.msra.mxu2 %v1470_v3  ;;  %1645 = vmatpush.msrb.mxu3 %v1486_v42 }
 0x2b4   :  { %1665 = vmatpush.msrb.mxu0 %v1502_v11  ;;  %1607 = vmatpush.msra.mxu1 %v1452_v61 }
 0x2b5   :  { %1626 = vmatpush.msra.mxu2 %v1469_v1  ;;  %1646 = vmatpush.msrb.mxu3 %v1485_v18 }
 0x2b6   :  { %1666 = vmatpush.msrb.mxu0 %v1501_v21  ;;  %1608 = vmatpush.msra.mxu1 %v1451_v20 }
 0x2b7   :  { %1627 = vmatpush.msra.mxu2 %v1468_v16  ;;  %1647 = vmatpush.msrb.mxu3 %v1484_v34 }
 0x2b8   :  { %1667 = vmatpush.msrb.mxu0 %v1500_v25  ;;  %1609 = vmatpush.msra.mxu1 %v1450_v33 }
 0x2b9   :  { %1628 = vmatpush.msra.mxu2 %v1467_v14  ;;  %1648 = vmatpush.msrb.mxu3 %v1483_v40 }
 0x2ba   :  { %1668 = vmatpush.msrb.mxu0 %v1499_v19  ;;  %1610 = vmatpush.msra.mxu1 %v1449_v39 }
 0x2bb   :  { %1629 = vmatpush.msra.mxu2 %v1466_v5  ;;  %1649 = vmatpush.msrb.mxu3 %v1482_v35 }
 0x2bc   :  { %1669 = vmatpush.msrb.mxu0 %v1498_v15  ;;  %1611 = vmatpush.msra.mxu1 %v1448_v10 }
 0x2bd   :  { %1630 = vmatpush.msra.mxu2 %v1465_v37  ;;  %1650 = vmatpush.msrb.mxu3 %v1481_v41 }
 0x2be   :  { %1670 = vmatpush.msrb.mxu0 %v1497_v60 }
 0x2bf   :  { %1631 = vmatpush.msra.mxu2 %v1464_v0  ;;  %1651 = vmatpush.msrb.mxu3 %v1480_v4 }
 0x2c0   :  { %1671 = vmatpush.msrb.mxu0 %v1496_v36 }
 0x2fd   :  { %v1726_v49 = vpop.permute.xlu2 %1725 }
 0x2fe   :  { %v1728_v38 = vunpack.i.h.bf16 %v1726_v49  ;;  %v1727_v8 = vunpack.i.l.bf16 %v1726_v49 }
 0x300   :  { %v1336_v26 = vmax.f32 %v2744_v12, %v1727_v8  ;;  %v1298_v59 = vrot.slane %v1728_v38, 1  ;;  %v1305_v50 = vrot.slane %v1727_v8, 1  ;;  %v1299_v17 = vrot.slane %v1728_v38, 2 }
 0x301   :  { %v1306_v53 = vrot.slane %v1727_v8, 2  ;;  %v1300_v51 = vrot.slane %v1728_v38, 3  ;;  %v1307_v22 = vrot.slane %v1727_v8, 3  ;;  %v1328_v46 = vmax.f32 %v2606_v63, %v1728_v38 }
 0x302   :  { %v1346_v58 = vrot.slane %v1336_v26, 7  ;;  %v1337_v7 = vmax.f32 %v2752_v48, %v1305_v50  ;;  %v1329_v9 = vmax.f32 %v2592_v2, %v1298_v59  ;;  %v1330_v55 = vmax.f32 %v2625_v43, %v1299_v17 }
 0x303   :  { %v1338_v62 = vmax.f32 %v2754_v32, %v1306_v53  ;;  %v1339_v47 = vmax.f32 %v2796_v31, %v1307_v22  ;;  %v1308_v23 = vrot.slane %v1727_v8, 4  ;;  %v1331_v52 = vmax.f32 %v2655_v30, %v1300_v51 }
 0x304   :  { %v1347_v56 = vsel %vm678_vm4, %v1346_v58, %v1328_v46  ;;  %v1351_v12 = vrot.slane %v1337_v7, 7  ;;  %v1309_v13 = vrot.slane %v1727_v8, 5  ;;  %v1301_v3 = vrot.slane %v1728_v38, 4 }
 0x305   :  { %1532 = vmatmul.f32.vlgmr.msrb.gmra.mxu1 %v1347_v56  ;;  %v1356_v45 = vrot.slane %v1338_v62, 7  ;;  %v1361_v63 = vrot.slane %v1339_v47, 7  ;;  %v1340_v2 = vmax.f32 %v2807_v44, %v1308_v23  ;;  %v1310_v32 = vrot.slane %v1727_v8, 6 }
 0x306   :  { %v1352_v48 = vsel %vm678_vm4, %v1351_v12, %v1329_v9  ;;  %v1341_v43 = vmax.f32 %v2825_v54, %v1309_v13  ;;  %v1302_v61 = vrot.slane %v1728_v38, 5  ;;  %v1303_v1 = vrot.slane %v1728_v38, 6 }
 0x307   :  { %1552 = vmatmul.f32.vlgmr.msrb.gmra.mxu2 %v1352_v48  ;;  %v1357_v31 = vsel %vm678_vm4, %v1356_v45, %v1330_v55  ;;  %v1362_v42 = vsel %vm678_vm4, %v1361_v63, %v1331_v52  ;;  %v1366_v11 = vrot.slane %v1340_v2, 7  ;;  %v1342_v30 = vmax.f32 %v2827_v24, %v1310_v32 }
 0x308   :  { %1572 = vmatmul.f32.vlgmr.msra.gmra.mxu3 %v1357_v31  ;;  %1592 = vmatmul.f32.vlgmr.msra.gmra.mxu0 %v1362_v42  ;;  %v1304_v18 = vrot.slane %v1728_v38, 7  ;;  %v1311_v21 = vrot.slane %v1727_v8, 7  ;;  %v1332_v20 = vmax.f32 %v2683_v27, %v1301_v3  ;;  %v1371_v44 = vrot.slane %v1341_v43, 7 }
 0x309   :  { %v1376_v16 = vrot.slane %v1342_v30, 7  ;;  %v1333_v33 = vmax.f32 %v2765_v28, %v1302_v61  ;;  %v1334_v54 = vmax.f32 %v2774_v29, %v1303_v1 }
 0x30a   :  { %v1343_v34 = vmax.f32 %v2848_v6, %v1311_v21  ;;  %v1367_v25 = vsel %vm678_vm4, %v1366_v11, %v1332_v20  ;;  %v1335_v14 = vmax.f32 %v2846_v57, %v1304_v18  ;;  %v1731_v6 = vld [vmem:[%s3110_s6] ss:$0 sm:$0xff] }
 0x30b   :  { %v1372_v24 = vsel %vm678_vm4, %v1371_v44, %v1333_v33  ;;  %v1377_v19 = vsel %vm678_vm4, %v1376_v16, %v1334_v54 }
 0x30c   :  { %v1381_v40 = vrot.slane %v1343_v34, 7 }
 0x30d   :  { %1612 = vmatmul.f32.vlgmr.msra.gmra.mxu1 %v1367_v25 }
 0x30e   :  { %v1382_v27 = vsel %vm678_vm4, %v1381_v40, %v1335_v14 }
 0x30f   :  { %1632 = vmatmul.f32.vlgmr.msra.gmra.mxu2 %v1372_v24 }
 0x310   :  { %1652 = vmatmul.f32.vlgmr.msrb.gmra.mxu3 %v1377_v19  ;;  %1672 = vmatmul.f32.vlgmr.msrb.gmra.mxu0 %v1382_v27 }
 0x382   :  { %v1533_v28 = vpop.f32.mrf.mxu1 }
 0x383   :  { %v1534_v39 = vadd.f32 %v1731_v6, %v1533_v28 }
 0x385   :  { %v1593_v57 = vpop.f32.mrf.mxu0 }
 0x38a   :  { %v1553_v5 = vpop.f32.mrf.mxu2  ;;  %v1613_v37 = vpop.f32.mrf.mxu1 }
 0x38b   :  { %v1554_v29 = vadd.f32 %v1553_v5, %v1534_v39  ;;  %v1573_v35 = vpop.f32.mrf.mxu3 }
 0x38d   :  { %v1574_v15 = vadd.f32 %v1573_v35, %v1554_v29  ;;  %v1673_v49 = vpop.f32.mrf.mxu0 }
 0x38f   :  { %v1594_v10 = vadd.f32 %v1593_v57, %v1574_v15 }
 0x391   :  { %v1614_v41 = vadd.f32 %v1613_v37, %v1594_v10 }
 0x392   :  { %v1633_v60 = vpop.f32.mrf.mxu2 }
 0x393   :  { %v1634_v0 = vadd.f32 %v1633_v60, %v1614_v41  ;;  %v1653_v4 = vpop.f32.mrf.mxu3 }
 0x395   :  { %v1654_v36 = vadd.f32 %v1653_v4, %v1634_v0 }
 0x397   :  { %v1674_v38 = vadd.f32 %v1673_v49, %v1654_v36 }
 0x399   :  { %1677 = vst.msk [vmem:[#allocation2] sm:$0x3] %vm1676_vm11, %v1674_v38 }
 0x39a   :  { %1688 = dma.vmem_to_hbm [thread:$0]  %s1684_s15, 32, %s1686_s1, [#allocation3]  }
 0x39b   :  { %1756 = dma.done.wait [#allocation3], 32  }
 0x39c   :  { %1757 = vsyncadd [#allocation3], 4294967264 }
 0x39d   :  { %1693 = vsyncpa [#allocation3], 1 }

</bundles_post_ra>
